<compile_context>
chip_gen: v7x
topology: tpu7x:2x2x1
jax: 0.10.0
libtpu: 0.0.40
codegen_flags: <defaults>
</compile_context>

<pallas_src>
import functools

import jax
import jax.numpy as jnp
from jax import lax
from jax.experimental import pallas as pl
from jax.experimental.pallas import tpu as pltpu


def _round_up(x, m):
    return ((x + m - 1) // m) * m


def _pick_time_chunk(T, max_chunk=16):
    tc = min(T, max_chunk)
    while T % tc:
        tc -= 1
    return max(tc, 1)


# ----------------------------------------------------------------------------
# Tiled matmul (+bias, optional fused ReLU on the input) kernel.
# Used for: per-layer input projection  x @ W_ih + (b_ih+b_hh)
#           FC head                     relu(y) @ fc_w + fc_b
# ----------------------------------------------------------------------------
def _matmul_bias_kernel(x_ref, w_ref, b_ref, o_ref, acc_ref, *, relu):
    @pl.when(pl.program_id(2) == 0)
    def _():
        acc_ref[...] = jnp.zeros_like(acc_ref)

    x = x_ref[...]
    if relu:
        x = jnp.maximum(x, 0.0)        # elementwise on x, safe per-k-chunk
    acc_ref[...] += jnp.dot(x.astype(jnp.bfloat16), w_ref[...],
                            preferred_element_type=jnp.float32)

    @pl.when(pl.program_id(2) == pl.num_programs(2) - 1)
    def _():
        o_ref[...] = (acc_ref[...] + b_ref[...]).astype(o_ref.dtype)


def matmul_bias(x, w, b, *, relu=False, tm_max=256, tn_max=512, tk_max=512):
    """x: [M,K] f32, w: [K,N] bf16, b: [N] f32 -> [M,N] f32  ((relu(x)) @ w + b)."""
    M, K = x.shape
    Kw, N = w.shape
    assert K == Kw

    tm = min(tm_max, _round_up(M, 8))
    tn = min(tn_max, _round_up(N, 128))
    tk = min(tk_max, _round_up(K, 128))
    Mp, Np, Kp = _round_up(M, tm), _round_up(N, tn), _round_up(K, tk)

    xp = x if (Mp == M and Kp == K) else jnp.pad(x, ((0, Mp - M), (0, Kp - K)))
    wp = w if (Kp == K and Np == N) else jnp.pad(w, ((0, Kp - K), (0, Np - N)))
    bp = (b if Np == N else jnp.pad(b, (0, Np - N))).reshape(1, Np)

    flops = 2 * Mp * Np * Kp
    bytes_accessed = 4 * Mp * Kp + 2 * Kp * Np + 4 * Mp * Np

    out = pl.pallas_call(
        functools.partial(_matmul_bias_kernel, relu=relu),
        grid=(Mp // tm, Np // tn, Kp // tk),
        in_specs=[
            pl.BlockSpec((tm, tk), lambda i, j, k: (i, k)),
            pl.BlockSpec((tk, tn), lambda i, j, k: (k, j)),
            pl.BlockSpec((1, tn), lambda i, j, k: (0, j)),
        ],
        out_specs=pl.BlockSpec((tm, tn), lambda i, j, k: (i, j)),
        out_shape=jax.ShapeDtypeStruct((Mp, Np), jnp.float32),
        scratch_shapes=[pltpu.VMEM((tm, tn), jnp.float32)],
        compiler_params=pltpu.CompilerParams(
            dimension_semantics=("parallel", "parallel", "arbitrary"),
            vmem_limit_bytes=64 * 1024 * 1024),
        cost_estimate=pl.CostEstimate(flops=flops, transcendentals=0,
                                      bytes_accessed=bytes_accessed),
    )(xp, wp, bp)

    if Mp != M or Np != N:
        out = out[:M, :N]
    return out


# ----------------------------------------------------------------------------
# LSTM recurrence kernel: x-projection precomputed; per step only h @ W_hh.
# One grid iteration processes Tc time steps; h/c persist in VMEM scratch.
# ----------------------------------------------------------------------------
def _lstm_recurrence_kernel(gx_ref, whh_ref, h0_ref, c0_ref,
                            y_ref, hT_ref, cT_ref,
                            h_scr, c_scr):
    @pl.when(pl.program_id(0) == 0)
    def _():
        h_scr[...] = h0_ref[...]
        c_scr[...] = c0_ref[...]

    Hp = whh_ref.shape[0]        # hidden padded to multiple of 128 -> aligned gate slices
    Tc = gx_ref.shape[0]

    def step(i, carry):
        h, c = carry
        gates = gx_ref[i] + jnp.dot(h.astype(jnp.bfloat16), whh_ref[...],
                                    preferred_element_type=jnp.float32)   # [Bp, 4Hp] f32
        i_g = jax.nn.sigmoid(gates[:, 0 * Hp:1 * Hp])
        f_g = jax.nn.sigmoid(gates[:, 1 * Hp:2 * Hp])
        g_g = jnp.tanh(gates[:, 2 * Hp:3 * Hp])
        o_g = jax.nn.sigmoid(gates[:, 3 * Hp:4 * Hp])
        c_new = f_g * c + i_g * g_g
        h_new = o_g * jnp.tanh(c_new)
        y_ref[i] = h_new.astype(y_ref.dtype)
        return (h_new, c_new)

    h_fin, c_fin = lax.fori_loop(0, Tc, step, (h_scr[...], c_scr[...]), unroll=True)
    h_scr[...] = h_fin
    c_scr[...] = c_fin

    @pl.when(pl.program_id(0) == pl.num_programs(0) - 1)
    def _():
        hT_ref[...] = h_fin.astype(hT_ref.dtype)
        cT_ref[...] = c_fin.astype(cT_ref.dtype)


def lstm_recurrence(gates_x, w_hh, h0, c0):
    """gates_x: [T, Bp, 4Hp] f32 (x@W_ih + bias pre-added), w_hh: [Hp, 4Hp] bf16,
       h0/c0: [Bp, Hp] f32 -> (y [T,Bp,Hp] f32, h_T [Bp,Hp], c_T [Bp,Hp])."""
    T, Bp, G = gates_x.shape
    Hp = G // 4
    Tc = _pick_time_chunk(T)
    const2 = lambda t: (0, 0)

    n_steps = T // Tc
    flops = 2 * T * Bp * Hp * G + 10 * T * Bp * Hp
    bytes_accessed = 4 * T * Bp * G + 2 * Hp * G + 4 * T * Bp * Hp

    return pl.pallas_call(
        _lstm_recurrence_kernel,
        grid=(n_steps,),
        in_specs=[
            pl.BlockSpec((Tc, Bp, G), lambda t: (t, 0, 0)),   # precomputed x-gate chunk
            pl.BlockSpec((Hp, G), const2),                    # W_hh (bf16), resident
            pl.BlockSpec((Bp, Hp), const2),                   # h0
            pl.BlockSpec((Bp, Hp), const2),                   # c0
        ],
        out_specs=(
            pl.BlockSpec((Tc, Bp, Hp), lambda t: (t, 0, 0)),  # y chunk
            pl.BlockSpec((Bp, Hp), const2),                   # h_T (written on last step)
            pl.BlockSpec((Bp, Hp), const2),                   # c_T
        ),
        out_shape=(
            jax.ShapeDtypeStruct((T, Bp, Hp), jnp.float32),
            jax.ShapeDtypeStruct((Bp, Hp), jnp.float32),
            jax.ShapeDtypeStruct((Bp, Hp), jnp.float32),
        ),
        scratch_shapes=[
            pltpu.VMEM((Bp, Hp), jnp.float32),    # h state
            pltpu.VMEM((Bp, Hp), jnp.float32),    # c state
        ],
        compiler_params=pltpu.CompilerParams(
            dimension_semantics=("arbitrary",),   # recurrence over time chunks
            vmem_limit_bytes=64 * 1024 * 1024),
        cost_estimate=pl.CostEstimate(flops=flops, transcendentals=4 * T * Bp * Hp,
                                      bytes_accessed=bytes_accessed),
    )(gates_x, w_hh, h0, c0)


# ----------------------------------------------------------------------------
# Parameter construction (deterministic, mimics the module's __init__ shapes).
# Weights are stored pre-padded to lane/sublane-friendly shapes; matmul weights
# are stored in bf16 (MXU-native input dtype).
# ----------------------------------------------------------------------------
def _pad_gate_weight(w, H, Hp):
    # w: [H, 4H] with gate blocks (i,f,g,o) along columns -> [Hp, 4*Hp]
    w4 = w.reshape(H, 4, H)
    w4 = jnp.pad(w4, ((0, Hp - H), (0, 0), (0, Hp - H)))
    return w4.reshape(Hp, 4 * Hp)


def _pad_gate_bias(b, H, Hp):
    # b: [4H] -> [4*Hp]
    b4 = jnp.pad(b.reshape(4, H), ((0, 0), (0, Hp - H)))
    return b4.reshape(4 * Hp)


def init_params(key, *, vocab_size, hidden, num_layers):
    Hp = _round_up(hidden, 128)
    Vp = _round_up(vocab_size, 128)
    ks = jax.random.split(key, 2 + 4 * num_layers)

    # Embedding: uniform(-0.1, 0.1), shape [V, H]; columns padded to Hp (gather on rows).
    emb = jax.random.uniform(ks[0], (vocab_size, hidden),
                             minval=-0.1, maxval=0.1, dtype=jnp.float32)
    emb = jnp.pad(emb, ((0, 0), (0, Hp - hidden)))

    # LSTM: PyTorch default uniform(-1/sqrt(H), 1/sqrt(H)); stored transposed [H, 4H],
    # gate order i,f,g,o (PyTorch's W_ih/W_hh layout).
    s = 1.0 / float(hidden) ** 0.5
    lstm = []
    for l in range(num_layers):
        k_ih, k_hh, k_bih, k_bhh = ks[1 + 4 * l: 5 + 4 * l]
        w_ih = jax.random.uniform(k_ih, (hidden, 4 * hidden), minval=-s, maxval=s, dtype=jnp.float32)
        w_hh = jax.random.uniform(k_hh, (hidden, 4 * hidden), minval=-s, maxval=s, dtype=jnp.float32)
        b_ih = jax.random.uniform(k_bih, (4 * hidden,), minval=-s, maxval=s, dtype=jnp.float32)
        b_hh = jax.random.uniform(k_bhh, (4 * hidden,), minval=-s, maxval=s, dtype=jnp.float32)
        lstm.append((
            _pad_gate_weight(w_ih, hidden, Hp).astype(jnp.bfloat16),
            _pad_gate_weight(w_hh, hidden, Hp).astype(jnp.bfloat16),
            _pad_gate_bias(b_ih + b_hh, hidden, Hp),            # f32, folded into x-projection
        ))

    # fc Linear: weight uniform(-0.1, 0.1), bias 0; stored transposed [H, V], padded.
    fc_w = jax.random.uniform(ks[-1], (hidden, vocab_size),
                              minval=-0.1, maxval=0.1, dtype=jnp.float32)
    fc_w = jnp.pad(fc_w, ((0, Hp - hidden), (0, Vp - vocab_size))).astype(jnp.bfloat16)
    fc_b = jnp.zeros((Vp,), dtype=jnp.float32)
    return {"emb": emb, "lstm": lstm, "fc_w": fc_w, "fc_b": fc_b}


# ----------------------------------------------------------------------------
# Decoder forward (matches Decoder.forward: returns (logits, hidden, score=None))
# ----------------------------------------------------------------------------
@jax.jit
def decoder_forward(tokens, h0, c0, params):
    """tokens: [B, T] int32; h0, c0: [num_layers, B, H] f32."""
    B, T = tokens.shape
    H = h0.shape[2]
    Hp = params["emb"].shape[1]
    V = params["emb"].shape[0]
    Bp = _round_up(B, 8)

    # Embedding lookup, directly time-major (no [B,T,H]->[T,B,H] transpose of the slab).
    x = jnp.take(params["emb"], tokens.T, axis=0)            # [T, B, Hp]
    if Bp != B:
        x = jnp.pad(x, ((0, 0), (0, Bp - B), (0, 0)))        # [T, Bp, Hp]
    if Bp != B or Hp != H:
        h0 = jnp.pad(h0, ((0, 0), (0, Bp - B), (0, Hp - H)))
        c0 = jnp.pad(c0, ((0, 0), (0, Bp - B), (0, Hp - H)))

    h_finals, c_finals = [], []
    for l, (w_ih, w_hh, bias) in enumerate(params["lstm"]):
        # Hoisted input projection: one big MXU matmul over all time steps.
        gx = matmul_bias(x.reshape(T * Bp, Hp), w_ih, bias).reshape(T, Bp, 4 * Hp)
        x, h_l, c_l = lstm_recurrence(gx, w_hh, h0[l], c0[l])
        h_finals.append(h_l[:B, :H])
        c_finals.append(c_l[:B, :H])
        # TODO(synk): inter-layer LSTM dropout (training mode) skipped (eval identity).
    h_n = jnp.stack(h_finals, axis=0)                        # [L, B, H]
    c_n = jnp.stack(c_finals, axis=0)

    # FC head (ReLU -> Dropout[identity] -> Linear) on the flattened time-major slab.
    logits_p = matmul_bias(x.reshape(T * Bp, Hp), params["fc_w"], params["fc_b"],
                           relu=True)                        # [T*Bp, Vp]
    logits = logits_p.reshape(T, Bp, -1)[:, :B, :V]          # [T, B, V]
    logits = jnp.transpose(logits, (1, 0, 2))                # [B, T, V] (batch_first)
    return logits, (h_n, c_n), None                          # score is None


if __name__ == "__main__":
    # Small config consistent with the module's forward.
    B, T = 2, 8
    HIDDEN = 32          # dec_hidden_size
    NUM_LAYERS = 2       # dec_num_layers
    VOCAB = 64           # tokenizer.vocab_size
    PAD_ID = 0           # tokenizer.pad_token_id (numerically unused after uniform_ init)

    key = jax.random.PRNGKey(0)
    k_par, k_tok, k_h, k_c = jax.random.split(key, 4)

    params = init_params(k_par, vocab_size=VOCAB, hidden=HIDDEN, num_layers=NUM_LAYERS)
    tokens = jax.random.randint(k_tok, (B, T), 0, VOCAB, dtype=jnp.int32)
    h0 = jax.random.normal(k_h, (NUM_LAYERS, B, HIDDEN), dtype=jnp.float32)
    c0 = jax.random.normal(k_c, (NUM_LAYERS, B, HIDDEN), dtype=jnp.float32)

    logits, (h_n, c_n), score = decoder_forward(tokens, h0, c0, params)
    jax.block_until_ready((logits, h_n, c_n))

    assert logits.shape == (B, T, VOCAB)
    assert h_n.shape == (NUM_LAYERS, B, HIDDEN)
    assert c_n.shape == (NUM_LAYERS, B, HIDDEN)
    assert score is None
    assert bool(jnp.all(jnp.isfinite(logits)))
    print("KERNEL_OK")
</pallas_src>

<mosaic_0001>
module attributes {stable_mosaic.version = 11 : i64} {
  func.func @_matmul_bias_kernel(%arg0: i32, %arg1: i32, %arg2: i32, %arg3: memref<64x128xf32, #tpu.memory_space<vmem>>, %arg4: memref<128x512xbf16, #tpu.memory_space<vmem>>, %arg5: memref<1x512xf32, #tpu.memory_space<vmem>>, %arg6: memref<64x512xf32, #tpu.memory_space<vmem>>, %arg7: memref<64x512xf32, #tpu.memory_space<vmem>>) attributes {dimension_semantics = [#tpu.dimension_semantics<parallel>, #tpu.dimension_semantics<parallel>, #tpu.dimension_semantics<arbitrary>], iteration_bounds = array<i64: 1, 1, 1>, scalar_prefetch = 0 : i64, scratch_operands = 1 : i64, tpu.core_type = #tpu.core_type<tc>, window_params = [{transform_indices = @transform_0, window_bounds = array<i64: 64, 128>}, {transform_indices = @transform_1, window_bounds = array<i64: 128, 512>}, {transform_indices = @transform_2, window_bounds = array<i64: 1, 512>}, {transform_indices = @transform_3, window_bounds = array<i64: 64, 512>}]} {
    %c0_i32 = arith.constant 0 : i32
    %0 = arith.cmpi eq, %arg2, %c0_i32 : i32
    %1 = arith.extui %0 : i1 to i32
    %c0_i32_0 = arith.constant 0 : i32
    %2 = arith.cmpi ne, %1, %c0_i32_0 : i32
    scf.if %2 {
      %cst_10 = arith.constant 0.000000e+00 : f32
      %13 = vector.broadcast %cst_10 : f32 to vector<64x512xf32>
      %c0_11 = arith.constant 0 : index
      %c0_12 = arith.constant 0 : index
      %14 = vector.load %arg7[%c0_11, %c0_12] : memref<64x512xf32, #tpu.memory_space<vmem>>, vector<64x512xf32>
      tpu.vector_store %arg7[%c0_11, %c0_12], %13 {strides = array<i32>} : memref<64x512xf32, #tpu.memory_space<vmem>>, vector<64x512xf32>,
    } else {
    }
    %c0 = arith.constant 0 : index
    %c0_1 = arith.constant 0 : index
    %3 = vector.load %arg3[%c0, %c0_1] : memref<64x128xf32, #tpu.memory_space<vmem>>, vector<64x128xf32>
    %c0_2 = arith.constant 0 : index
    %c0_3 = arith.constant 0 : index
    %4 = vector.load %arg7[%c0_2, %c0_3] : memref<64x512xf32, #tpu.memory_space<vmem>>, vector<64x512xf32>
    %5 = arith.truncf %3 : vector<64x128xf32> to vector<64x128xbf16>
    %c0_4 = arith.constant 0 : index
    %c0_5 = arith.constant 0 : index
    %6 = vector.load %arg4[%c0_4, %c0_5] : memref<128x512xbf16, #tpu.memory_space<vmem>>, vector<128x512xbf16>
    %cst = arith.constant dense<0.000000e+00> : vector<64x512xf32>
    %7 = tpu.matmul %5, %6, %cst {dimension_numbers = #tpu.dot_dimension_numbers<[1], [0], [0], [1], [0, 0, 1, 1], [], []>} : vector<64x128xbf16>, vector<128x512xbf16>, vector<64x512xf32> -> vector<64x512xf32>
    %8 = arith.addf %4, %7 : vector<64x512xf32>
    %c0_6 = arith.constant 0 : index
    %c0_7 = arith.constant 0 : index
    %9 = vector.load %arg7[%c0_6, %c0_7] : memref<64x512xf32, #tpu.memory_space<vmem>>, vector<64x512xf32>
    tpu.vector_store %arg7[%c0_6, %c0_7], %8 {strides = array<i32>} : memref<64x512xf32, #tpu.memory_space<vmem>>, vector<64x512xf32>,
    %c0_i32_8 = arith.constant 0 : i32
    %10 = arith.cmpi eq, %arg2, %c0_i32_8 : i32
    %11 = arith.extui %10 : i1 to i32
    %c0_i32_9 = arith.constant 0 : i32
    %12 = arith.cmpi ne, %11, %c0_i32_9 : i32
    scf.if %12 {
      %c0_10 = arith.constant 0 : index
      %c0_11 = arith.constant 0 : index
      %13 = vector.load %arg7[%c0_10, %c0_11] : memref<64x512xf32, #tpu.memory_space<vmem>>, vector<64x512xf32>
      %c0_12 = arith.constant 0 : index
      %c0_13 = arith.constant 0 : index
      %14 = vector.load %arg5[%c0_12, %c0_13] : memref<1x512xf32, #tpu.memory_space<vmem>>, vector<1x512xf32>
      %15 = vector.broadcast %14 : vector<1x512xf32> to vector<64x512xf32>
      %16 = arith.addf %13, %15 : vector<64x512xf32>
      %c0_14 = arith.constant 0 : index
      %c0_15 = arith.constant 0 : index
      %17 = vector.load %arg6[%c0_14, %c0_15] : memref<64x512xf32, #tpu.memory_space<vmem>>, vector<64x512xf32>
      tpu.vector_store %arg6[%c0_14, %c0_15], %16 {strides = array<i32>} : memref<64x512xf32, #tpu.memory_space<vmem>>, vector<64x512xf32>,
    } else {
    }
    return
  }
  func.func @transform_0(%arg0: i32, %arg1: i32, %arg2: i32) -> (i32, i32) {
    %c0_i32 = arith.constant 0 : i32
    return %arg0, %arg2 : i32, i32
  }
  func.func @transform_1(%arg0: i32, %arg1: i32, %arg2: i32) -> (i32, i32) {
    %c0_i32 = arith.constant 0 : i32
    return %arg2, %arg1 : i32, i32
  }
  func.func @transform_2(%arg0: i32, %arg1: i32, %arg2: i32) -> (i32, i32) {
    %c0_i32 = arith.constant 0 : i32
    %c0_i32_0 = arith.constant 0 : i32
    return %c0_i32, %arg1 : i32, i32
  }
  func.func @transform_3(%arg0: i32, %arg1: i32, %arg2: i32) -> (i32, i32) {
    %c0_i32 = arith.constant 0 : i32
    return %arg0, %arg1 : i32, i32
  }
}

module attributes {stable_mosaic.version = 11 : i64} {
  func.func @_matmul_bias_kernel(%arg0: i32, %arg1: i32, %arg2: i32, %arg3: memref<64x128xf32, #tpu.memory_space<vmem>>, %arg4: memref<128x128xbf16, #tpu.memory_space<vmem>>, %arg5: memref<1x128xf32, #tpu.memory_space<vmem>>, %arg6: memref<64x128xf32, #tpu.memory_space<vmem>>, %arg7: memref<64x128xf32, #tpu.memory_space<vmem>>) attributes {dimension_semantics = [#tpu.dimension_semantics<parallel>, #tpu.dimension_semantics<parallel>, #tpu.dimension_semantics<arbitrary>], iteration_bounds = array<i64: 1, 1, 1>, scalar_prefetch = 0 : i64, scratch_operands = 1 : i64, tpu.core_type = #tpu.core_type<tc>, window_params = [{transform_indices = @transform_0, window_bounds = array<i64: 64, 128>}, {transform_indices = @transform_1, window_bounds = array<i64: 128, 128>}, {transform_indices = @transform_2, window_bounds = array<i64: 1, 128>}, {transform_indices = @transform_3, window_bounds = array<i64: 64, 128>}]} {
    %c0_i32 = arith.constant 0 : i32
    %0 = arith.cmpi eq, %arg2, %c0_i32 : i32
    %1 = arith.extui %0 : i1 to i32
    %c0_i32_0 = arith.constant 0 : i32
    %2 = arith.cmpi ne, %1, %c0_i32_0 : i32
    scf.if %2 {
      %cst_11 = arith.constant 0.000000e+00 : f32
      %15 = vector.broadcast %cst_11 : f32 to vector<64x128xf32>
      %c0_12 = arith.constant 0 : index
      %c0_13 = arith.constant 0 : index
      %16 = vector.load %arg7[%c0_12, %c0_13] : memref<64x128xf32, #tpu.memory_space<vmem>>, vector<64x128xf32>
      tpu.vector_store %arg7[%c0_12, %c0_13], %15 {strides = array<i32>} : memref<64x128xf32, #tpu.memory_space<vmem>>, vector<64x128xf32>,
    } else {
    }
    %c0 = arith.constant 0 : index
    %c0_1 = arith.constant 0 : index
    %3 = vector.load %arg3[%c0, %c0_1] : memref<64x128xf32, #tpu.memory_space<vmem>>, vector<64x128xf32>
    %cst = arith.constant 0.000000e+00 : f32
    %4 = vector.broadcast %cst : f32 to vector<64x128xf32>
    %5 = arith.maximumf %3, %4 : vector<64x128xf32>
    %c0_2 = arith.constant 0 : index
    %c0_3 = arith.constant 0 : index
    %6 = vector.load %arg7[%c0_2, %c0_3] : memref<64x128xf32, #tpu.memory_space<vmem>>, vector<64x128xf32>
    %7 = arith.truncf %5 : vector<64x128xf32> to vector<64x128xbf16>
    %c0_4 = arith.constant 0 : index
    %c0_5 = arith.constant 0 : index
    %8 = vector.load %arg4[%c0_4, %c0_5] : memref<128x128xbf16, #tpu.memory_space<vmem>>, vector<128x128xbf16>
    %cst_6 = arith.constant dense<0.000000e+00> : vector<64x128xf32>
    %9 = tpu.matmul %7, %8, %cst_6 {dimension_numbers = #tpu.dot_dimension_numbers<[1], [0], [0], [1], [0, 0, 1, 1], [], []>} : vector<64x128xbf16>, vector<128x128xbf16>, vector<64x128xf32> -> vector<64x128xf32>
    %10 = arith.addf %6, %9 : vector<64x128xf32>
    %c0_7 = arith.constant 0 : index
    %c0_8 = arith.constant 0 : index
    %11 = vector.load %arg7[%c0_7, %c0_8] : memref<64x128xf32, #tpu.memory_space<vmem>>, vector<64x128xf32>
    tpu.vector_store %arg7[%c0_7, %c0_8], %10 {strides = array<i32>} : memref<64x128xf32, #tpu.memory_space<vmem>>, vector<64x128xf32>,
    %c0_i32_9 = arith.constant 0 : i32
    %12 = arith.cmpi eq, %arg2, %c0_i32_9 : i32
    %13 = arith.extui %12 : i1 to i32
    %c0_i32_10 = arith.constant 0 : i32
    %14 = arith.cmpi ne, %13, %c0_i32_10 : i32
    scf.if %14 {
      %c0_11 = arith.constant 0 : index
      %c0_12 = arith.constant 0 : index
      %15 = vector.load %arg7[%c0_11, %c0_12] : memref<64x128xf32, #tpu.memory_space<vmem>>, vector<64x128xf32>
      %c0_13 = arith.constant 0 : index
      %c0_14 = arith.constant 0 : index
      %16 = vector.load %arg5[%c0_13, %c0_14] : memref<1x128xf32, #tpu.memory_space<vmem>>, vector<1x128xf32>
      %17 = vector.broadcast %16 : vector<1x128xf32> to vector<64x128xf32>
      %18 = arith.addf %15, %17 : vector<64x128xf32>
      %c0_15 = arith.constant 0 : index
      %c0_16 = arith.constant 0 : index
      %19 = vector.load %arg6[%c0_15, %c0_16] : memref<64x128xf32, #tpu.memory_space<vmem>>, vector<64x128xf32>
      tpu.vector_store %arg6[%c0_15, %c0_16], %18 {strides = array<i32>} : memref<64x128xf32, #tpu.memory_space<vmem>>, vector<64x128xf32>,
    } else {
    }
    return
  }
  func.func @transform_0(%arg0: i32, %arg1: i32, %arg2: i32) -> (i32, i32) {
    %c0_i32 = arith.constant 0 : i32
    return %arg0, %arg2 : i32, i32
  }
  func.func @transform_1(%arg0: i32, %arg1: i32, %arg2: i32) -> (i32, i32) {
    %c0_i32 = arith.constant 0 : i32
    return %arg2, %arg1 : i32, i32
  }
  func.func @transform_2(%arg0: i32, %arg1: i32, %arg2: i32) -> (i32, i32) {
    %c0_i32 = arith.constant 0 : i32
    %c0_i32_0 = arith.constant 0 : i32
    return %c0_i32, %arg1 : i32, i32
  }
  func.func @transform_3(%arg0: i32, %arg1: i32, %arg2: i32) -> (i32, i32) {
    %c0_i32 = arith.constant 0 : i32
    return %arg0, %arg1 : i32, i32
  }
}

module attributes {stable_mosaic.version = 11 : i64} {
  func.func @_lstm_recurrence_kernel(%arg0: i32, %arg1: memref<8x8x512xf32, #tpu.memory_space<vmem>>, %arg2: memref<128x512xbf16, #tpu.memory_space<vmem>>, %arg3: memref<8x128xf32, #tpu.memory_space<vmem>>, %arg4: memref<8x128xf32, #tpu.memory_space<vmem>>, %arg5: memref<8x8x128xf32, #tpu.memory_space<vmem>>, %arg6: memref<8x128xf32, #tpu.memory_space<vmem>>, %arg7: memref<8x128xf32, #tpu.memory_space<vmem>>, %arg8: memref<8x128xf32, #tpu.memory_space<vmem>>, %arg9: memref<8x128xf32, #tpu.memory_space<vmem>>) attributes {dimension_semantics = [#tpu.dimension_semantics<arbitrary>], iteration_bounds = array<i64: 1>, scalar_prefetch = 0 : i64, scratch_operands = 2 : i64, tpu.core_type = #tpu.core_type<tc>, window_params = [{transform_indices = @transform_0, window_bounds = array<i64: 8, 8, 512>}, {pipeline_mode = #tpu.pipeline_mode<synchronous>, transform_indices = @transform_1, window_bounds = array<i64: 128, 512>}, {pipeline_mode = #tpu.pipeline_mode<synchronous>, transform_indices = @transform_2, window_bounds = array<i64: 8, 128>}, {pipeline_mode = #tpu.pipeline_mode<synchronous>, transform_indices = @transform_3, window_bounds = array<i64: 8, 128>}, {transform_indices = @transform_4, window_bounds = array<i64: 8, 8, 128>}, {pipeline_mode = #tpu.pipeline_mode<synchronous>, transform_indices = @transform_5, window_bounds = array<i64: 8, 128>}, {pipeline_mode = #tpu.pipeline_mode<synchronous>, transform_indices = @transform_6, window_bounds = array<i64: 8, 128>}]} {
    %c0_i32 = arith.constant 0 : i32
    %0 = arith.cmpi eq, %arg0, %c0_i32 : i32
    %1 = arith.extui %0 : i1 to i32
    %c0_i32_0 = arith.constant 0 : i32
    %2 = arith.cmpi ne, %1, %c0_i32_0 : i32
    scf.if %2 {
      %c0_90 = arith.constant 0 : index
      %c0_91 = arith.constant 0 : index
      %298 = vector.load %arg3[%c0_90, %c0_91] : memref<8x128xf32, #tpu.memory_space<vmem>>, vector<8x128xf32>
      %c0_92 = arith.constant 0 : index
      %c0_93 = arith.constant 0 : index
      %299 = vector.load %arg8[%c0_92, %c0_93] : memref<8x128xf32, #tpu.memory_space<vmem>>, vector<8x128xf32>
      tpu.vector_store %arg8[%c0_92, %c0_93], %298 {strides = array<i32>} : memref<8x128xf32, #tpu.memory_space<vmem>>, vector<8x128xf32>,
      %c0_94 = arith.constant 0 : index
      %c0_95 = arith.constant 0 : index
      %300 = vector.load %arg4[%c0_94, %c0_95] : memref<8x128xf32, #tpu.memory_space<vmem>>, vector<8x128xf32>
      %c0_96 = arith.constant 0 : index
      %c0_97 = arith.constant 0 : index
      %301 = vector.load %arg9[%c0_96, %c0_97] : memref<8x128xf32, #tpu.memory_space<vmem>>, vector<8x128xf32>
      tpu.vector_store %arg9[%c0_96, %c0_97], %300 {strides = array<i32>} : memref<8x128xf32, #tpu.memory_space<vmem>>, vector<8x128xf32>,
    } else {
    }
    %c0 = arith.constant 0 : index
    %c0_1 = arith.constant 0 : index
    %3 = vector.load %arg8[%c0, %c0_1] : memref<8x128xf32, #tpu.memory_space<vmem>>, vector<8x128xf32>
    %c0_2 = arith.constant 0 : index
    %c0_3 = arith.constant 0 : index
    %4 = vector.load %arg9[%c0_2, %c0_3] : memref<8x128xf32, #tpu.memory_space<vmem>>, vector<8x128xf32>
    %c0_i32_4 = arith.constant 0 : i32
    %5 = arith.index_cast %c0_i32_4 : i32 to index
    %c0_5 = arith.constant 0 : index
    %c0_6 = arith.constant 0 : index
    %6 = vector.load %arg1[%5, %c0_5, %c0_6] : memref<8x8x512xf32, #tpu.memory_space<vmem>>, vector<1x8x512xf32>
    %7 = vector.shape_cast %6 : vector<1x8x512xf32> to vector<8x512xf32>
    %8 = arith.truncf %3 : vector<8x128xf32> to vector<8x128xbf16>
    %c0_7 = arith.constant 0 : index
    %c0_8 = arith.constant 0 : index
    %9 = vector.load %arg2[%c0_7, %c0_8] : memref<128x512xbf16, #tpu.memory_space<vmem>>, vector<128x512xbf16>
    %cst = arith.constant dense<0.000000e+00> : vector<8x512xf32>
    %10 = tpu.matmul %8, %9, %cst {dimension_numbers = #tpu.dot_dimension_numbers<[1], [0], [0], [1], [0, 0, 1, 1], [], []>} : vector<8x128xbf16>, vector<128x512xbf16>, vector<8x512xf32> -> vector<8x512xf32>
    %11 = arith.addf %7, %10 : vector<8x512xf32>
    %12 = vector.extract_strided_slice %11 {offsets = [0, 0], sizes = [8, 128], strides = [1, 1]} : vector<8x512xf32> to vector<8x128xf32>
    %13 = arith.negf %12 : vector<8x128xf32>
    %14 = math.exp %13 : vector<8x128xf32>
    %cst_9 = arith.constant 1.000000e+00 : f32
    %15 = vector.broadcast %cst_9 : f32 to vector<8x128xf32>
    %16 = arith.addf %15, %14 : vector<8x128xf32>
    %17 = arith.divf %15, %16 : vector<8x128xf32>
    %18 = vector.extract_strided_slice %11 {offsets = [0, 128], sizes = [8, 128], strides = [1, 1]} : vector<8x512xf32> to vector<8x128xf32>
    %19 = arith.negf %18 : vector<8x128xf32>
    %20 = math.exp %19 : vector<8x128xf32>
    %cst_10 = arith.constant 1.000000e+00 : f32
    %21 = vector.broadcast %cst_10 : f32 to vector<8x128xf32>
    %22 = arith.addf %21, %20 : vector<8x128xf32>
    %23 = arith.divf %21, %22 : vector<8x128xf32>
    %24 = vector.extract_strided_slice %11 {offsets = [0, 256], sizes = [8, 128], strides = [1, 1]} : vector<8x512xf32> to vector<8x128xf32>
    %25 = math.tanh %24 : vector<8x128xf32>
    %26 = vector.extract_strided_slice %11 {offsets = [0, 384], sizes = [8, 128], strides = [1, 1]} : vector<8x512xf32> to vector<8x128xf32>
    %27 = arith.negf %26 : vector<8x128xf32>
    %28 = math.exp %27 : vector<8x128xf32>
    %cst_11 = arith.constant 1.000000e+00 : f32
    %29 = vector.broadcast %cst_11 : f32 to vector<8x128xf32>
    %30 = arith.addf %29, %28 : vector<8x128xf32>
    %31 = arith.divf %29, %30 : vector<8x128xf32>
    %32 = arith.mulf %23, %4 : vector<8x128xf32>
    %33 = arith.mulf %17, %25 : vector<8x128xf32>
    %34 = arith.addf %32, %33 : vector<8x128xf32>
    %35 = math.tanh %34 : vector<8x128xf32>
    %36 = arith.mulf %31, %35 : vector<8x128xf32>
    %37 = arith.index_cast %c0_i32_4 : i32 to index
    %c0_12 = arith.constant 0 : index
    %c0_13 = arith.constant 0 : index
    %38 = vector.load %arg5[%37, %c0_12, %c0_13] : memref<8x8x128xf32, #tpu.memory_space<vmem>>, vector<1x8x128xf32>
    %39 = vector.shape_cast %38 : vector<1x8x128xf32> to vector<8x128xf32>
    %40 = vector.shape_cast %36 : vector<8x128xf32> to vector<1x8x128xf32>
    tpu.vector_store %arg5[%37, %c0_12, %c0_13], %40 {strides = array<i32>} : memref<8x8x128xf32, #tpu.memory_space<vmem>>, vector<1x8x128xf32>,
    %c1_i32 = arith.constant 1 : i32
    %41 = arith.index_cast %c1_i32 : i32 to index
    %c0_14 = arith.constant 0 : index
    %c0_15 = arith.constant 0 : index
    %42 = vector.load %arg1[%41, %c0_14, %c0_15] : memref<8x8x512xf32, #tpu.memory_space<vmem>>, vector<1x8x512xf32>
    %43 = vector.shape_cast %42 : vector<1x8x512xf32> to vector<8x512xf32>
    %44 = arith.truncf %36 : vector<8x128xf32> to vector<8x128xbf16>
    %c0_16 = arith.constant 0 : index
    %c0_17 = arith.constant 0 : index
    %45 = vector.load %arg2[%c0_16, %c0_17] : memref<128x512xbf16, #tpu.memory_space<vmem>>, vector<128x512xbf16>
    %cst_18 = arith.constant dense<0.000000e+00> : vector<8x512xf32>
    %46 = tpu.matmul %44, %45, %cst_18 {dimension_numbers = #tpu.dot_dimension_numbers<[1], [0], [0], [1], [0, 0, 1, 1], [], []>} : vector<8x128xbf16>, vector<128x512xbf16>, vector<8x512xf32> -> vector<8x512xf32>
    %47 = arith.addf %43, %46 : vector<8x512xf32>
    %48 = vector.extract_strided_slice %47 {offsets = [0, 0], sizes = [8, 128], strides = [1, 1]} : vector<8x512xf32> to vector<8x128xf32>
    %49 = arith.negf %48 : vector<8x128xf32>
    %50 = math.exp %49 : vector<8x128xf32>
    %cst_19 = arith.constant 1.000000e+00 : f32
    %51 = vector.broadcast %cst_19 : f32 to vector<8x128xf32>
    %52 = arith.addf %51, %50 : vector<8x128xf32>
    %53 = arith.divf %51, %52 : vector<8x128xf32>
    %54 = vector.extract_strided_slice %47 {offsets = [0, 128], sizes = [8, 128], strides = [1, 1]} : vector<8x512xf32> to vector<8x128xf32>
    %55 = arith.negf %54 : vector<8x128xf32>
    %56 = math.exp %55 : vector<8x128xf32>
    %cst_20 = arith.constant 1.000000e+00 : f32
    %57 = vector.broadcast %cst_20 : f32 to vector<8x128xf32>
    %58 = arith.addf %57, %56 : vector<8x128xf32>
    %59 = arith.divf %57, %58 : vector<8x128xf32>
    %60 = vector.extract_strided_slice %47 {offsets = [0, 256], sizes = [8, 128], strides = [1, 1]} : vector<8x512xf32> to vector<8x128xf32>
    %61 = math.tanh %60 : vector<8x128xf32>
    %62 = vector.extract_strided_slice %47 {offsets = [0, 384], sizes = [8, 128], strides = [1, 1]} : vector<8x512xf32> to vector<8x128xf32>
    %63 = arith.negf %62 : vector<8x128xf32>
    %64 = math.exp %63 : vector<8x128xf32>
    %cst_21 = arith.constant 1.000000e+00 : f32
    %65 = vector.broadcast %cst_21 : f32 to vector<8x128xf32>
    %66 = arith.addf %65, %64 : vector<8x128xf32>
    %67 = arith.divf %65, %66 : vector<8x128xf32>
    %68 = arith.mulf %59, %34 : vector<8x128xf32>
    %69 = arith.mulf %53, %61 : vector<8x128xf32>
    %70 = arith.addf %68, %69 : vector<8x128xf32>
    %71 = math.tanh %70 : vector<8x128xf32>
    %72 = arith.mulf %67, %71 : vector<8x128xf32>
    %73 = arith.index_cast %c1_i32 : i32 to index
    %c0_22 = arith.constant 0 : index
    %c0_23 = arith.constant 0 : index
    %74 = vector.load %arg5[%73, %c0_22, %c0_23] : memref<8x8x128xf32, #tpu.memory_space<vmem>>, vector<1x8x128xf32>
    %75 = vector.shape_cast %74 : vector<1x8x128xf32> to vector<8x128xf32>
    %76 = vector.shape_cast %72 : vector<8x128xf32> to vector<1x8x128xf32>
    tpu.vector_store %arg5[%73, %c0_22, %c0_23], %76 {strides = array<i32>} : memref<8x8x128xf32, #tpu.memory_space<vmem>>, vector<1x8x128xf32>,
    %c2_i32 = arith.constant 2 : i32
    %77 = arith.index_cast %c2_i32 : i32 to index
    %c0_24 = arith.constant 0 : index
    %c0_25 = arith.constant 0 : index
    %78 = vector.load %arg1[%77, %c0_24, %c0_25] : memref<8x8x512xf32, #tpu.memory_space<vmem>>, vector<1x8x512xf32>
    %79 = vector.shape_cast %78 : vector<1x8x512xf32> to vector<8x512xf32>
    %80 = arith.truncf %72 : vector<8x128xf32> to vector<8x128xbf16>
    %c0_26 = arith.constant 0 : index
    %c0_27 = arith.constant 0 : index
    %81 = vector.load %arg2[%c0_26, %c0_27] : memref<128x512xbf16, #tpu.memory_space<vmem>>, vector<128x512xbf16>
    %cst_28 = arith.constant dense<0.000000e+00> : vector<8x512xf32>
    %82 = tpu.matmul %80, %81, %cst_28 {dimension_numbers = #tpu.dot_dimension_numbers<[1], [0], [0], [1], [0, 0, 1, 1], [], []>} : vector<8x128xbf16>, vector<128x512xbf16>, vector<8x512xf32> -> vector<8x512xf32>
    %83 = arith.addf %79, %82 : vector<8x512xf32>
    %84 = vector.extract_strided_slice %83 {offsets = [0, 0], sizes = [8, 128], strides = [1, 1]} : vector<8x512xf32> to vector<8x128xf32>
    %85 = arith.negf %84 : vector<8x128xf32>
    %86 = math.exp %85 : vector<8x128xf32>
    %cst_29 = arith.constant 1.000000e+00 : f32
    %87 = vector.broadcast %cst_29 : f32 to vector<8x128xf32>
    %88 = arith.addf %87, %86 : vector<8x128xf32>
    %89 = arith.divf %87, %88 : vector<8x128xf32>
    %90 = vector.extract_strided_slice %83 {offsets = [0, 128], sizes = [8, 128], strides = [1, 1]} : vector<8x512xf32> to vector<8x128xf32>
    %91 = arith.negf %90 : vector<8x128xf32>
    %92 = math.exp %91 : vector<8x128xf32>
    %cst_30 = arith.constant 1.000000e+00 : f32
    %93 = vector.broadcast %cst_30 : f32 to vector<8x128xf32>
    %94 = arith.addf %93, %92 : vector<8x128xf32>
    %95 = arith.divf %93, %94 : vector<8x128xf32>
    %96 = vector.extract_strided_slice %83 {offsets = [0, 256], sizes = [8, 128], strides = [1, 1]} : vector<8x512xf32> to vector<8x128xf32>
    %97 = math.tanh %96 : vector<8x128xf32>
    %98 = vector.extract_strided_slice %83 {offsets = [0, 384], sizes = [8, 128], strides = [1, 1]} : vector<8x512xf32> to vector<8x128xf32>
    %99 = arith.negf %98 : vector<8x128xf32>
    %100 = math.exp %99 : vector<8x128xf32>
    %cst_31 = arith.constant 1.000000e+00 : f32
    %101 = vector.broadcast %cst_31 : f32 to vector<8x128xf32>
    %102 = arith.addf %101, %100 : vector<8x128xf32>
    %103 = arith.divf %101, %102 : vector<8x128xf32>
    %104 = arith.mulf %95, %70 : vector<8x128xf32>
    %105 = arith.mulf %89, %97 : vector<8x128xf32>
    %106 = arith.addf %104, %105 : vector<8x128xf32>
    %107 = math.tanh %106 : vector<8x128xf32>
    %108 = arith.mulf %103, %107 : vector<8x128xf32>
    %109 = arith.index_cast %c2_i32 : i32 to index
    %c0_32 = arith.constant 0 : index
    %c0_33 = arith.constant 0 : index
    %110 = vector.load %arg5[%109, %c0_32, %c0_33] : memref<8x8x128xf32, #tpu.memory_space<vmem>>, vector<1x8x128xf32>
    %111 = vector.shape_cast %110 : vector<1x8x128xf32> to vector<8x128xf32>
    %112 = vector.shape_cast %108 : vector<8x128xf32> to vector<1x8x128xf32>
    tpu.vector_store %arg5[%109, %c0_32, %c0_33], %112 {strides = array<i32>} : memref<8x8x128xf32, #tpu.memory_space<vmem>>, vector<1x8x128xf32>,
    %c3_i32 = arith.constant 3 : i32
    %113 = arith.index_cast %c3_i32 : i32 to index
    %c0_34 = arith.constant 0 : index
    %c0_35 = arith.constant 0 : index
    %114 = vector.load %arg1[%113, %c0_34, %c0_35] : memref<8x8x512xf32, #tpu.memory_space<vmem>>, vector<1x8x512xf32>
    %115 = vector.shape_cast %114 : vector<1x8x512xf32> to vector<8x512xf32>
    %116 = arith.truncf %108 : vector<8x128xf32> to vector<8x128xbf16>
    %c0_36 = arith.constant 0 : index
    %c0_37 = arith.constant 0 : index
    %117 = vector.load %arg2[%c0_36, %c0_37] : memref<128x512xbf16, #tpu.memory_space<vmem>>, vector<128x512xbf16>
    %cst_38 = arith.constant dense<0.000000e+00> : vector<8x512xf32>
    %118 = tpu.matmul %116, %117, %cst_38 {dimension_numbers = #tpu.dot_dimension_numbers<[1], [0], [0], [1], [0, 0, 1, 1], [], []>} : vector<8x128xbf16>, vector<128x512xbf16>, vector<8x512xf32> -> vector<8x512xf32>
    %119 = arith.addf %115, %118 : vector<8x512xf32>
    %120 = vector.extract_strided_slice %119 {offsets = [0, 0], sizes = [8, 128], strides = [1, 1]} : vector<8x512xf32> to vector<8x128xf32>
    %121 = arith.negf %120 : vector<8x128xf32>
    %122 = math.exp %121 : vector<8x128xf32>
    %cst_39 = arith.constant 1.000000e+00 : f32
    %123 = vector.broadcast %cst_39 : f32 to vector<8x128xf32>
    %124 = arith.addf %123, %122 : vector<8x128xf32>
    %125 = arith.divf %123, %124 : vector<8x128xf32>
    %126 = vector.extract_strided_slice %119 {offsets = [0, 128], sizes = [8, 128], strides = [1, 1]} : vector<8x512xf32> to vector<8x128xf32>
    %127 = arith.negf %126 : vector<8x128xf32>
    %128 = math.exp %127 : vector<8x128xf32>
    %cst_40 = arith.constant 1.000000e+00 : f32
    %129 = vector.broadcast %cst_40 : f32 to vector<8x128xf32>
    %130 = arith.addf %129, %128 : vector<8x128xf32>
    %131 = arith.divf %129, %130 : vector<8x128xf32>
    %132 = vector.extract_strided_slice %119 {offsets = [0, 256], sizes = [8, 128], strides = [1, 1]} : vector<8x512xf32> to vector<8x128xf32>
    %133 = math.tanh %132 : vector<8x128xf32>
    %134 = vector.extract_strided_slice %119 {offsets = [0, 384], sizes = [8, 128], strides = [1, 1]} : vector<8x512xf32> to vector<8x128xf32>
    %135 = arith.negf %134 : vector<8x128xf32>
    %136 = math.exp %135 : vector<8x128xf32>
    %cst_41 = arith.constant 1.000000e+00 : f32
    %137 = vector.broadcast %cst_41 : f32 to vector<8x128xf32>
    %138 = arith.addf %137, %136 : vector<8x128xf32>
    %139 = arith.divf %137, %138 : vector<8x128xf32>
    %140 = arith.mulf %131, %106 : vector<8x128xf32>
    %141 = arith.mulf %125, %133 : vector<8x128xf32>
    %142 = arith.addf %140, %141 : vector<8x128xf32>
    %143 = math.tanh %142 : vector<8x128xf32>
    %144 = arith.mulf %139, %143 : vector<8x128xf32>
    %145 = arith.index_cast %c3_i32 : i32 to index
    %c0_42 = arith.constant 0 : index
    %c0_43 = arith.constant 0 : index
    %146 = vector.load %arg5[%145, %c0_42, %c0_43] : memref<8x8x128xf32, #tpu.memory_space<vmem>>, vector<1x8x128xf32>
    %147 = vector.shape_cast %146 : vector<1x8x128xf32> to vector<8x128xf32>
    %148 = vector.shape_cast %144 : vector<8x128xf32> to vector<1x8x128xf32>
    tpu.vector_store %arg5[%145, %c0_42, %c0_43], %148 {strides = array<i32>} : memref<8x8x128xf32, #tpu.memory_space<vmem>>, vector<1x8x128xf32>,
    %c4_i32 = arith.constant 4 : i32
    %149 = arith.index_cast %c4_i32 : i32 to index
    %c0_44 = arith.constant 0 : index
    %c0_45 = arith.constant 0 : index
    %150 = vector.load %arg1[%149, %c0_44, %c0_45] : memref<8x8x512xf32, #tpu.memory_space<vmem>>, vector<1x8x512xf32>
    %151 = vector.shape_cast %150 : vector<1x8x512xf32> to vector<8x512xf32>
    %152 = arith.truncf %144 : vector<8x128xf32> to vector<8x128xbf16>
    %c0_46 = arith.constant 0 : index
    %c0_47 = arith.constant 0 : index
    %153 = vector.load %arg2[%c0_46, %c0_47] : memref<128x512xbf16, #tpu.memory_space<vmem>>, vector<128x512xbf16>
    %cst_48 = arith.constant dense<0.000000e+00> : vector<8x512xf32>
    %154 = tpu.matmul %152, %153, %cst_48 {dimension_numbers = #tpu.dot_dimension_numbers<[1], [0], [0], [1], [0, 0, 1, 1], [], []>} : vector<8x128xbf16>, vector<128x512xbf16>, vector<8x512xf32> -> vector<8x512xf32>
    %155 = arith.addf %151, %154 : vector<8x512xf32>
    %156 = vector.extract_strided_slice %155 {offsets = [0, 0], sizes = [8, 128], strides = [1, 1]} : vector<8x512xf32> to vector<8x128xf32>
    %157 = arith.negf %156 : vector<8x128xf32>
    %158 = math.exp %157 : vector<8x128xf32>
    %cst_49 = arith.constant 1.000000e+00 : f32
    %159 = vector.broadcast %cst_49 : f32 to vector<8x128xf32>
    %160 = arith.addf %159, %158 : vector<8x128xf32>
    %161 = arith.divf %159, %160 : vector<8x128xf32>
    %162 = vector.extract_strided_slice %155 {offsets = [0, 128], sizes = [8, 128], strides = [1, 1]} : vector<8x512xf32> to vector<8x128xf32>
    %163 = arith.negf %162 : vector<8x128xf32>
    %164 = math.exp %163 : vector<8x128xf32>
    %cst_50 = arith.constant 1.000000e+00 : f32
    %165 = vector.broadcast %cst_50 : f32 to vector<8x128xf32>
    %166 = arith.addf %165, %164 : vector<8x128xf32>
    %167 = arith.divf %165, %166 : vector<8x128xf32>
    %168 = vector.extract_strided_slice %155 {offsets = [0, 256], sizes = [8, 128], strides = [1, 1]} : vector<8x512xf32> to vector<8x128xf32>
    %169 = math.tanh %168 : vector<8x128xf32>
    %170 = vector.extract_strided_slice %155 {offsets = [0, 384], sizes = [8, 128], strides = [1, 1]} : vector<8x512xf32> to vector<8x128xf32>
    %171 = arith.negf %170 : vector<8x128xf32>
    %172 = math.exp %171 : vector<8x128xf32>
    %cst_51 = arith.constant 1.000000e+00 : f32
    %173 = vector.broadcast %cst_51 : f32 to vector<8x128xf32>
    %174 = arith.addf %173, %172 : vector<8x128xf32>
    %175 = arith.divf %173, %174 : vector<8x128xf32>
    %176 = arith.mulf %167, %142 : vector<8x128xf32>
    %177 = arith.mulf %161, %169 : vector<8x128xf32>
    %178 = arith.addf %176, %177 : vector<8x128xf32>
    %179 = math.tanh %178 : vector<8x128xf32>
    %180 = arith.mulf %175, %179 : vector<8x128xf32>
    %181 = arith.index_cast %c4_i32 : i32 to index
    %c0_52 = arith.constant 0 : index
    %c0_53 = arith.constant 0 : index
    %182 = vector.load %arg5[%181, %c0_52, %c0_53] : memref<8x8x128xf32, #tpu.memory_space<vmem>>, vector<1x8x128xf32>
    %183 = vector.shape_cast %182 : vector<1x8x128xf32> to vector<8x128xf32>
    %184 = vector.shape_cast %180 : vector<8x128xf32> to vector<1x8x128xf32>
    tpu.vector_store %arg5[%181, %c0_52, %c0_53], %184 {strides = array<i32>} : memref<8x8x128xf32, #tpu.memory_space<vmem>>, vector<1x8x128xf32>,
    %c5_i32 = arith.constant 5 : i32
    %185 = arith.index_cast %c5_i32 : i32 to index
    %c0_54 = arith.constant 0 : index
    %c0_55 = arith.constant 0 : index
    %186 = vector.load %arg1[%185, %c0_54, %c0_55] : memref<8x8x512xf32, #tpu.memory_space<vmem>>, vector<1x8x512xf32>
    %187 = vector.shape_cast %186 : vector<1x8x512xf32> to vector<8x512xf32>
    %188 = arith.truncf %180 : vector<8x128xf32> to vector<8x128xbf16>
    %c0_56 = arith.constant 0 : index
    %c0_57 = arith.constant 0 : index
    %189 = vector.load %arg2[%c0_56, %c0_57] : memref<128x512xbf16, #tpu.memory_space<vmem>>, vector<128x512xbf16>
    %cst_58 = arith.constant dense<0.000000e+00> : vector<8x512xf32>
    %190 = tpu.matmul %188, %189, %cst_58 {dimension_numbers = #tpu.dot_dimension_numbers<[1], [0], [0], [1], [0, 0, 1, 1], [], []>} : vector<8x128xbf16>, vector<128x512xbf16>, vector<8x512xf32> -> vector<8x512xf32>
    %191 = arith.addf %187, %190 : vector<8x512xf32>
    %192 = vector.extract_strided_slice %191 {offsets = [0, 0], sizes = [8, 128], strides = [1, 1]} : vector<8x512xf32> to vector<8x128xf32>
    %193 = arith.negf %192 : vector<8x128xf32>
    %194 = math.exp %193 : vector<8x128xf32>
    %cst_59 = arith.constant 1.000000e+00 : f32
    %195 = vector.broadcast %cst_59 : f32 to vector<8x128xf32>
    %196 = arith.addf %195, %194 : vector<8x128xf32>
    %197 = arith.divf %195, %196 : vector<8x128xf32>
    %198 = vector.extract_strided_slice %191 {offsets = [0, 128], sizes = [8, 128], strides = [1, 1]} : vector<8x512xf32> to vector<8x128xf32>
    %199 = arith.negf %198 : vector<8x128xf32>
    %200 = math.exp %199 : vector<8x128xf32>
    %cst_60 = arith.constant 1.000000e+00 : f32
    %201 = vector.broadcast %cst_60 : f32 to vector<8x128xf32>
    %202 = arith.addf %201, %200 : vector<8x128xf32>
    %203 = arith.divf %201, %202 : vector<8x128xf32>
    %204 = vector.extract_strided_slice %191 {offsets = [0, 256], sizes = [8, 128], strides = [1, 1]} : vector<8x512xf32> to vector<8x128xf32>
    %205 = math.tanh %204 : vector<8x128xf32>
    %206 = vector.extract_strided_slice %191 {offsets = [0, 384], sizes = [8, 128], strides = [1, 1]} : vector<8x512xf32> to vector<8x128xf32>
    %207 = arith.negf %206 : vector<8x128xf32>
    %208 = math.exp %207 : vector<8x128xf32>
    %cst_61 = arith.constant 1.000000e+00 : f32
    %209 = vector.broadcast %cst_61 : f32 to vector<8x128xf32>
    %210 = arith.addf %209, %208 : vector<8x128xf32>
    %211 = arith.divf %209, %210 : vector<8x128xf32>
    %212 = arith.mulf %203, %178 : vector<8x128xf32>
    %213 = arith.mulf %197, %205 : vector<8x128xf32>
    %214 = arith.addf %212, %213 : vector<8x128xf32>
    %215 = math.tanh %214 : vector<8x128xf32>
    %216 = arith.mulf %211, %215 : vector<8x128xf32>
    %217 = arith.index_cast %c5_i32 : i32 to index
    %c0_62 = arith.constant 0 : index
    %c0_63 = arith.constant 0 : index
    %218 = vector.load %arg5[%217, %c0_62, %c0_63] : memref<8x8x128xf32, #tpu.memory_space<vmem>>, vector<1x8x128xf32>
    %219 = vector.shape_cast %218 : vector<1x8x128xf32> to vector<8x128xf32>
    %220 = vector.shape_cast %216 : vector<8x128xf32> to vector<1x8x128xf32>
    tpu.vector_store %arg5[%217, %c0_62, %c0_63], %220 {strides = array<i32>} : memref<8x8x128xf32, #tpu.memory_space<vmem>>, vector<1x8x128xf32>,
    %c6_i32 = arith.constant 6 : i32
    %221 = arith.index_cast %c6_i32 : i32 to index
    %c0_64 = arith.constant 0 : index
    %c0_65 = arith.constant 0 : index
    %222 = vector.load %arg1[%221, %c0_64, %c0_65] : memref<8x8x512xf32, #tpu.memory_space<vmem>>, vector<1x8x512xf32>
    %223 = vector.shape_cast %222 : vector<1x8x512xf32> to vector<8x512xf32>
    %224 = arith.truncf %216 : vector<8x128xf32> to vector<8x128xbf16>
    %c0_66 = arith.constant 0 : index
    %c0_67 = arith.constant 0 : index
    %225 = vector.load %arg2[%c0_66, %c0_67] : memref<128x512xbf16, #tpu.memory_space<vmem>>, vector<128x512xbf16>
    %cst_68 = arith.constant dense<0.000000e+00> : vector<8x512xf32>
    %226 = tpu.matmul %224, %225, %cst_68 {dimension_numbers = #tpu.dot_dimension_numbers<[1], [0], [0], [1], [0, 0, 1, 1], [], []>} : vector<8x128xbf16>, vector<128x512xbf16>, vector<8x512xf32> -> vector<8x512xf32>
    %227 = arith.addf %223, %226 : vector<8x512xf32>
    %228 = vector.extract_strided_slice %227 {offsets = [0, 0], sizes = [8, 128], strides = [1, 1]} : vector<8x512xf32> to vector<8x128xf32>
    %229 = arith.negf %228 : vector<8x128xf32>
    %230 = math.exp %229 : vector<8x128xf32>
    %cst_69 = arith.constant 1.000000e+00 : f32
    %231 = vector.broadcast %cst_69 : f32 to vector<8x128xf32>
    %232 = arith.addf %231, %230 : vector<8x128xf32>
    %233 = arith.divf %231, %232 : vector<8x128xf32>
    %234 = vector.extract_strided_slice %227 {offsets = [0, 128], sizes = [8, 128], strides = [1, 1]} : vector<8x512xf32> to vector<8x128xf32>
    %235 = arith.negf %234 : vector<8x128xf32>
    %236 = math.exp %235 : vector<8x128xf32>
    %cst_70 = arith.constant 1.000000e+00 : f32
    %237 = vector.broadcast %cst_70 : f32 to vector<8x128xf32>
    %238 = arith.addf %237, %236 : vector<8x128xf32>
    %239 = arith.divf %237, %238 : vector<8x128xf32>
    %240 = vector.extract_strided_slice %227 {offsets = [0, 256], sizes = [8, 128], strides = [1, 1]} : vector<8x512xf32> to vector<8x128xf32>
    %241 = math.tanh %240 : vector<8x128xf32>
    %242 = vector.extract_strided_slice %227 {offsets = [0, 384], sizes = [8, 128], strides = [1, 1]} : vector<8x512xf32> to vector<8x128xf32>
    %243 = arith.negf %242 : vector<8x128xf32>
    %244 = math.exp %243 : vector<8x128xf32>
    %cst_71 = arith.constant 1.000000e+00 : f32
    %245 = vector.broadcast %cst_71 : f32 to vector<8x128xf32>
    %246 = arith.addf %245, %244 : vector<8x128xf32>
    %247 = arith.divf %245, %246 : vector<8x128xf32>
    %248 = arith.mulf %239, %214 : vector<8x128xf32>
    %249 = arith.mulf %233, %241 : vector<8x128xf32>
    %250 = arith.addf %248, %249 : vector<8x128xf32>
    %251 = math.tanh %250 : vector<8x128xf32>
    %252 = arith.mulf %247, %251 : vector<8x128xf32>
    %253 = arith.index_cast %c6_i32 : i32 to index
    %c0_72 = arith.constant 0 : index
    %c0_73 = arith.constant 0 : index
    %254 = vector.load %arg5[%253, %c0_72, %c0_73] : memref<8x8x128xf32, #tpu.memory_space<vmem>>, vector<1x8x128xf32>
    %255 = vector.shape_cast %254 : vector<1x8x128xf32> to vector<8x128xf32>
    %256 = vector.shape_cast %252 : vector<8x128xf32> to vector<1x8x128xf32>
    tpu.vector_store %arg5[%253, %c0_72, %c0_73], %256 {strides = array<i32>} : memref<8x8x128xf32, #tpu.memory_space<vmem>>, vector<1x8x128xf32>,
    %c7_i32 = arith.constant 7 : i32
    %257 = arith.index_cast %c7_i32 : i32 to index
    %c0_74 = arith.constant 0 : index
    %c0_75 = arith.constant 0 : index
    %258 = vector.load %arg1[%257, %c0_74, %c0_75] : memref<8x8x512xf32, #tpu.memory_space<vmem>>, vector<1x8x512xf32>
    %259 = vector.shape_cast %258 : vector<1x8x512xf32> to vector<8x512xf32>
    %260 = arith.truncf %252 : vector<8x128xf32> to vector<8x128xbf16>
    %c0_76 = arith.constant 0 : index
    %c0_77 = arith.constant 0 : index
    %261 = vector.load %arg2[%c0_76, %c0_77] : memref<128x512xbf16, #tpu.memory_space<vmem>>, vector<128x512xbf16>
    %cst_78 = arith.constant dense<0.000000e+00> : vector<8x512xf32>
    %262 = tpu.matmul %260, %261, %cst_78 {dimension_numbers = #tpu.dot_dimension_numbers<[1], [0], [0], [1], [0, 0, 1, 1], [], []>} : vector<8x128xbf16>, vector<128x512xbf16>, vector<8x512xf32> -> vector<8x512xf32>
    %263 = arith.addf %259, %262 : vector<8x512xf32>
    %264 = vector.extract_strided_slice %263 {offsets = [0, 0], sizes = [8, 128], strides = [1, 1]} : vector<8x512xf32> to vector<8x128xf32>
    %265 = arith.negf %264 : vector<8x128xf32>
    %266 = math.exp %265 : vector<8x128xf32>
    %cst_79 = arith.constant 1.000000e+00 : f32
    %267 = vector.broadcast %cst_79 : f32 to vector<8x128xf32>
    %268 = arith.addf %267, %266 : vector<8x128xf32>
    %269 = arith.divf %267, %268 : vector<8x128xf32>
    %270 = vector.extract_strided_slice %263 {offsets = [0, 128], sizes = [8, 128], strides = [1, 1]} : vector<8x512xf32> to vector<8x128xf32>
    %271 = arith.negf %270 : vector<8x128xf32>
    %272 = math.exp %271 : vector<8x128xf32>
    %cst_80 = arith.constant 1.000000e+00 : f32
    %273 = vector.broadcast %cst_80 : f32 to vector<8x128xf32>
    %274 = arith.addf %273, %272 : vector<8x128xf32>
    %275 = arith.divf %273, %274 : vector<8x128xf32>
    %276 = vector.extract_strided_slice %263 {offsets = [0, 256], sizes = [8, 128], strides = [1, 1]} : vector<8x512xf32> to vector<8x128xf32>
    %277 = math.tanh %276 : vector<8x128xf32>
    %278 = vector.extract_strided_slice %263 {offsets = [0, 384], sizes = [8, 128], strides = [1, 1]} : vector<8x512xf32> to vector<8x128xf32>
    %279 = arith.negf %278 : vector<8x128xf32>
    %280 = math.exp %279 : vector<8x128xf32>
    %cst_81 = arith.constant 1.000000e+00 : f32
    %281 = vector.broadcast %cst_81 : f32 to vector<8x128xf32>
    %282 = arith.addf %281, %280 : vector<8x128xf32>
    %283 = arith.divf %281, %282 : vector<8x128xf32>
    %284 = arith.mulf %275, %250 : vector<8x128xf32>
    %285 = arith.mulf %269, %277 : vector<8x128xf32>
    %286 = arith.addf %284, %285 : vector<8x128xf32>
    %287 = math.tanh %286 : vector<8x128xf32>
    %288 = arith.mulf %283, %287 : vector<8x128xf32>
    %289 = arith.index_cast %c7_i32 : i32 to index
    %c0_82 = arith.constant 0 : index
    %c0_83 = arith.constant 0 : index
    %290 = vector.load %arg5[%289, %c0_82, %c0_83] : memref<8x8x128xf32, #tpu.memory_space<vmem>>, vector<1x8x128xf32>
    %291 = vector.shape_cast %290 : vector<1x8x128xf32> to vector<8x128xf32>
    %292 = vector.shape_cast %288 : vector<8x128xf32> to vector<1x8x128xf32>
    tpu.vector_store %arg5[%289, %c0_82, %c0_83], %292 {strides = array<i32>} : memref<8x8x128xf32, #tpu.memory_space<vmem>>, vector<1x8x128xf32>,
    %c8_i32 = arith.constant 8 : i32
    %c0_84 = arith.constant 0 : index
    %c0_85 = arith.constant 0 : index
    %293 = vector.load %arg8[%c0_84, %c0_85] : memref<8x128xf32, #tpu.memory_space<vmem>>, vector<8x128xf32>
    tpu.vector_store %arg8[%c0_84, %c0_85], %288 {strides = array<i32>} : memref<8x128xf32, #tpu.memory_space<vmem>>, vector<8x128xf32>,
    %c0_86 = arith.constant 0 : index
    %c0_87 = arith.constant 0 : index
    %294 = vector.load %arg9[%c0_86, %c0_87] : memref<8x128xf32, #tpu.memory_space<vmem>>, vector<8x128xf32>
    tpu.vector_store %arg9[%c0_86, %c0_87], %286 {strides = array<i32>} : memref<8x128xf32, #tpu.memory_space<vmem>>, vector<8x128xf32>,
    %c0_i32_88 = arith.constant 0 : i32
    %295 = arith.cmpi eq, %arg0, %c0_i32_88 : i32
    %296 = arith.extui %295 : i1 to i32
    %c0_i32_89 = arith.constant 0 : i32
    %297 = arith.cmpi ne, %296, %c0_i32_89 : i32
    scf.if %297 {
      %c0_90 = arith.constant 0 : index
      %c0_91 = arith.constant 0 : index
      %298 = vector.load %arg6[%c0_90, %c0_91] : memref<8x128xf32, #tpu.memory_space<vmem>>, vector<8x128xf32>
      tpu.vector_store %arg6[%c0_90, %c0_91], %288 {strides = array<i32>} : memref<8x128xf32, #tpu.memory_space<vmem>>, vector<8x128xf32>,
      %c0_92 = arith.constant 0 : index
      %c0_93 = arith.constant 0 : index
      %299 = vector.load %arg7[%c0_92, %c0_93] : memref<8x128xf32, #tpu.memory_space<vmem>>, vector<8x128xf32>
      tpu.vector_store %arg7[%c0_92, %c0_93], %286 {strides = array<i32>} : memref<8x128xf32, #tpu.memory_space<vmem>>, vector<8x128xf32>,
    } else {
    }
    return
  }
  func.func @transform_0(%arg0: i32) -> (i32, i32, i32) {
    %c0_i32 = arith.constant 0 : i32
    %c0_i32_0 = arith.constant 0 : i32
    %c0_i32_1 = arith.constant 0 : i32
    return %arg0, %c0_i32, %c0_i32_0 : i32, i32, i32
  }
  func.func @transform_1(%arg0: i32) -> (i32, i32) {
    %c0_i32 = arith.constant 0 : i32
    %c0_i32_0 = arith.constant 0 : i32
    %c0_i32_1 = arith.constant 0 : i32
    return %c0_i32, %c0_i32_0 : i32, i32
  }
  func.func @transform_2(%arg0: i32) -> (i32, i32) {
    %c0_i32 = arith.constant 0 : i32
    %c0_i32_0 = arith.constant 0 : i32
    %c0_i32_1 = arith.constant 0 : i32
    return %c0_i32, %c0_i32_0 : i32, i32
  }
  func.func @transform_3(%arg0: i32) -> (i32, i32) {
    %c0_i32 = arith.constant 0 : i32
    %c0_i32_0 = arith.constant 0 : i32
    %c0_i32_1 = arith.constant 0 : i32
    return %c0_i32, %c0_i32_0 : i32, i32
  }
  func.func @transform_4(%arg0: i32) -> (i32, i32, i32) {
    %c0_i32 = arith.constant 0 : i32
    %c0_i32_0 = arith.constant 0 : i32
    %c0_i32_1 = arith.constant 0 : i32
    return %arg0, %c0_i32, %c0_i32_0 : i32, i32, i32
  }
  func.func @transform_5(%arg0: i32) -> (i32, i32) {
    %c0_i32 = arith.constant 0 : i32
    %c0_i32_0 = arith.constant 0 : i32
    %c0_i32_1 = arith.constant 0 : i32
    return %c0_i32, %c0_i32_0 : i32, i32
  }
  func.func @transform_6(%arg0: i32) -> (i32, i32) {
    %c0_i32 = arith.constant 0 : i32
    %c0_i32_0 = arith.constant 0 : i32
    %c0_i32_1 = arith.constant 0 : i32
    return %c0_i32, %c0_i32_0 : i32, i32
  }
}

</mosaic_0001>

<bundles_post_ra>
// kernel: decoder_forward.9
= control target key start
LH: loop header
LB: loop body
LE: loop exit
PB: predicated region body
PF: predicated region fallthrough
CT: control target
= control target key end

     0   :  { %8 = vsyncpa [#allocation4], 0  ;;  %s545_s0 = inlined_call_operand.hbm [shape: f32[64,128], index: 0, kind: input, shape index: {}]   ;;  %s546_s1 = inlined_call_operand.hbm [shape: bf16[128,128], index: 1, kind: input, shape index: {}]   ;;  %s547_s2 = inlined_call_operand.hbm [shape: f32[1,128], index: 2, kind: input, shape index: {}]   ;;  %s548_s3 = inlined_call_operand.hbm [shape: f32[64,128], index: 3, kind: output, shape index: {}]  }
   0x1   :  { %9 = vsyncpa [#allocation7], 0 }
   0x2   :  { %10 = vsyncpa [#allocation5], 0  ;;  %s463_s12 = smov [#allocation6]   ;;  %s369_s16 = scalar_lea.hbm %s546_s1, 1024 }
   0x3   :  { %s28_s13 = sshll.u32 %s463_s12, 4  ;;  %p370_p0 = scmp.ne.s32.totalorder %s546_s1, %s369_s16  ;;  %s29_s13 = int_to_ptr.vmem [resolvable:$true] %s28_s13 }
   0x4   :  { %p373_p1 = scmp.lt.u32.totalorder %s369_s16, %s546_s1 }
   0x6   :  { %p375_p2 = pnand %p373_p1, %p370_p0 }
   0x8   :  { %378 = shalt.err (!%p375_p2)
}
   0x9   :  { %s379_s21 = scalar_lea.vmem %s29_s13, 1024  ;;  %p384_p4 = scmp.lt.s32.totalorder %s29_s13, %s29_s13 }
   0xa   :  { %p380_p3 = scmp.ne.s32.totalorder %s29_s13, %s379_s21  ;;  %p385_p5 = scmp.lt.s32.totalorder %s379_s21, %s379_s21 }
   0xc   :  { %p386_p6 = por %p385_p5, %p384_p4 }
   0xe   :  { %p387_p7 = pnand %p386_p6, %p380_p3 }
  0x10   :  { %390 = shalt.err (!%p387_p7)
}
  0x11   :  { %s464_s22 = smov 64   ;;  %s465_s23 = smov 4  }
  0x12   :  { %34 = dma.hbm_to_vmem [thread:$0]  %s546_s1, 1024, %s29_s13, [#allocation7], %s464_s22, %s464_s22, %s465_s23  }
  0x13   :  { %s466_s26 = smov [#allocation3]   ;;  %s391_s30 = scalar_lea.hbm %s545_s0, 1024 }
  0x14   :  { %s16_s27 = sshll.u32 %s466_s26, 4  ;;  %p392_p8 = scmp.ne.s32.totalorder %s545_s0, %s391_s30  ;;  %s17_s27 = int_to_ptr.vmem [resolvable:$true] %s16_s27 }
  0x15   :  { %p395_p9 = scmp.lt.u32.totalorder %s391_s30, %s545_s0 }
  0x17   :  { %p397_p10 = pnand %p395_p9, %p392_p8 }
  0x19   :  { %400 = shalt.err (!%p397_p10)
}
  0x1a   :  { %s401_s8 = scalar_lea.vmem %s17_s27, 1024  ;;  %p406_p12 = scmp.lt.s32.totalorder %s17_s27, %s17_s27 }
  0x1b   :  { %p402_p11 = scmp.ne.s32.totalorder %s17_s27, %s401_s8  ;;  %p407_p13 = scmp.lt.s32.totalorder %s401_s8, %s401_s8 }
  0x1d   :  { %p408_p0 = por %p407_p13, %p406_p12 }
  0x1f   :  { %p409_p1 = pnand %p408_p0, %p402_p11 }
  0x21   :  { %412 = shalt.err (!%p409_p1)
}
  0x22   :  { %s467_s1 = smov 128   ;;  %s468_s9 = smov 8  }
  0x23   :  { %22 = dma.hbm_to_vmem [thread:$0]  %s545_s0, 1024, %s17_s27, [#allocation4], %s467_s1, %s467_s1, %s468_s9  }
  0x24   :  { %s469_s12 = smov [#allocation8]   ;;  %s413_s16 = scalar_lea.hbm %s547_s2, 16 }
  0x25   :  { %s41_s13 = sshll.u32 %s469_s12, 4  ;;  %p414_p2 = scmp.ne.s32.totalorder %s547_s2, %s413_s16  ;;  %s42_s13 = int_to_ptr.vmem [resolvable:$true] %s41_s13 }
  0x26   :  { %p417_p3 = scmp.lt.u32.totalorder %s413_s16, %s547_s2 }
  0x28   :  { %p419_p4 = pnand %p417_p3, %p414_p2 }
  0x2a   :  { %422 = shalt.err (!%p419_p4)
}
  0x2b   :  { %s423_s21 = scalar_lea.vmem %s42_s13, 16  ;;  %s427_s0 = scalar_lea.vmem %s42_s13, 32 }
  0x2c   :  { %p424_p5 = scmp.ne.s32.totalorder %s42_s13, %s423_s21  ;;  %p428_p6 = scmp.lt.s32.totalorder %s42_s13, %s42_s13 }
  0x2d   :  { %p429_p7 = scmp.lt.s32.totalorder %s427_s0, %s423_s21 }
  0x2f   :  { %p430_p8 = por %p429_p7, %p428_p6 }
  0x31   :  { %p431_p9 = pnand %p430_p8, %p424_p5 }
  0x33   :  { %434 = shalt.err (!%p431_p9)
}
  0x34   :  { %44 = dma.hbm_to_vmem [thread:$0]  %s547_s2, 16, %s42_s13, [#allocation7]  }
  0x35   :  { %457 = dma.done.wait [#allocation4], 1024  }
  0x36   :  { %458 = vsyncadd [#allocation4], 4294966272 }
  0x37   :  { %459 = dma.done.wait [#allocation7], 1040  }
  0x38   :  { %460 = vsyncadd [#allocation7], 4294966256  ;;  %v361_v0 = vld [vmem:[#allocation6] sm:$0xff]   ;;  %v362_v1 = vld [vmem:[#allocation6 + $0x8] sm:$0xff]   ;;  %s470_s2 = smov [#allocation9]  }
  0x39   :  { %313 = vmatprep.subr.bf16.mxu0 %v361_v0  ;;  %337 = vmatprep.subr.bf16.mxu1 %v361_v0  ;;  %v363_v2 = vld [vmem:[#allocation6 + $0x10] sm:$0xff]   ;;  %v364_v3 = vld [vmem:[#allocation6 + $0x18] sm:$0xff]   ;;  %v67_v4 = vld [vmem:[#allocation3] sm:$0xff]  ;;  %s279_s24 = sshll.u32 %s470_s2, 4  ;;  %s280_s24 = int_to_ptr.vmem [resolvable:$true] %s279_s24 }
  0x3a   :  { %314 = vmatpush3.bf16.msra.mxu0 %v361_v0  ;;  %345 = vmatpush3.bf16.msra.mxu1 %v361_v0  ;;  %v68_v5 = vld [vmem:[#allocation3 + $0x8] sm:$0xff]  ;;  %v71_v6 = vld [vmem:[#allocation3 + $0x20] sm:$0xff]  ;;  %v75_v7 = vmax.f32 %v67_v4, 0.0  ;;  %v367_v16 = vld [vmem:[#allocation6 + $0x30] sm:$0xff]   ;;  %s435_s25 = scalar_lea.vmem %s280_s24, 1024  ;;  %p440_p11 = scmp.lt.s32.totalorder %s280_s24, %s280_s24 }
  0x3b   :  { %315 = vmatprep.subr.bf16.mxu0 %v362_v1  ;;  %338 = vmatprep.subr.bf16.mxu1 %v362_v1  ;;  %v76_v8 = vmax.f32 %v68_v5, 0.0  ;;  %v72_v9 = vld [vmem:[#allocation3 + $0x28] sm:$0xff]  ;;  %v79_v10 = vmax.f32 %v71_v6, 0.0  ;;  %v365_v13 = vld [vmem:[#allocation6 + $0x20] sm:$0xff]   ;;  %v69_v17 = vld [vmem:[#allocation3 + $0x10] sm:$0xff]  ;;  %p436_p10 = scmp.ne.s32.totalorder %s280_s24, %s435_s25  ;;  %p441_p12 = scmp.lt.s32.totalorder %s435_s25, %s435_s25 }
  0x3c   :  { %v80_v11 = vmax.f32 %v72_v9, 0.0  ;;  %v366_v15 = vld [vmem:[#allocation6 + $0x28] sm:$0xff]   ;;  %v70_v18 = vld [vmem:[#allocation3 + $0x18] sm:$0xff]  ;;  %v73_v19 = vld [vmem:[#allocation3 + $0x30] sm:$0xff]  ;;  %v77_v22 = vmax.f32 %v69_v17, 0.0 }
  0x3d   :  { %v91_v12 = vpack.c.bf16 %v76_v8, %v75_v7  ;;  %v74_v20 = vld [vmem:[#allocation3 + $0x38] sm:$0xff]  ;;  %v78_v23 = vmax.f32 %v70_v18, 0.0  ;;  %v81_v24 = vmax.f32 %v73_v19, 0.0  ;;  %v300_v28 = vld [vmem:[#allocation8] ss:$0 sm:$0xff]  ;;  %p442_p13 = por %p441_p12, %p440_p11 }
  0x3e   :  { %316 = vmatpush3.bf16.msra.mxu0 %v362_v1  ;;  %346 = vmatpush3.bf16.msra.mxu1 %v362_v1  ;;  %v93_v14 = vpack.c.bf16 %v80_v11, %v79_v10  ;;  %v368_v21 = vld [vmem:[#allocation6 + $0x38] sm:$0xff]   ;;  %v82_v25 = vmax.f32 %v74_v20, 0.0 }
  0x3f   :  { %317 = vmatprep.subr.bf16.mxu0 %v363_v2  ;;  %339 = vmatprep.subr.bf16.mxu1 %v363_v2  ;;  %v92_v26 = vpack.c.bf16 %v78_v23, %v77_v22  ;;  %p443_p0 = pnand %p442_p13, %p436_p10 }
  0x40   :  { %329 = vmatprep.mubr.bf16.mxu0 %v91_v12  ;;  %333 = vmatprep.mubr.bf16.mxu1 %v93_v14  ;;  %v94_v27 = vpack.c.bf16 %v82_v25, %v81_v24 }
  0x42   :  { %318 = vmatpush3.bf16.msra.mxu0 %v363_v2  ;;  %347 = vmatpush3.bf16.msra.mxu1 %v363_v2 }
  0x43   :  { %319 = vmatprep.subr.bf16.mxu0 %v364_v3  ;;  %340 = vmatprep.subr.bf16.mxu1 %v364_v3 }
  0x46   :  { %320 = vmatpush3.bf16.msra.mxu0 %v364_v3  ;;  %348 = vmatpush3.bf16.msra.mxu1 %v364_v3 }
  0x47   :  { %321 = vmatprep.subr.bf16.mxu0 %v365_v13  ;;  %341 = vmatprep.subr.bf16.mxu1 %v365_v13 }
  0x4a   :  { %322 = vmatpush3.bf16.msra.mxu0 %v365_v13  ;;  %349 = vmatpush3.bf16.msra.mxu1 %v365_v13 }
  0x4b   :  { %323 = vmatprep.subr.bf16.mxu0 %v366_v15  ;;  %342 = vmatprep.subr.bf16.mxu1 %v366_v15 }
  0x4e   :  { %324 = vmatpush3.bf16.msra.mxu0 %v366_v15  ;;  %350 = vmatpush3.bf16.msra.mxu1 %v366_v15 }
  0x4f   :  { %325 = vmatprep.subr.bf16.mxu0 %v367_v16  ;;  %343 = vmatprep.subr.bf16.mxu1 %v367_v16 }
  0x52   :  { %326 = vmatpush3.bf16.msra.mxu0 %v367_v16  ;;  %351 = vmatpush3.bf16.msra.mxu1 %v367_v16 }
  0x53   :  { %327 = vmatprep.subr.bf16.mxu0 %v368_v21  ;;  %344 = vmatprep.subr.bf16.mxu1 %v368_v21 }
  0x56   :  { %328 = vmatpush3.bf16.msra.mxu0 %v368_v21  ;;  %352 = vmatpush3.bf16.msra.mxu1 %v368_v21 }
  0x59   :  { %330 = vmatmul.mubr.bf16.vlgmr.msra.gmra.mrb[0].mxu0 %v92_v26  ;;  %334 = vmatmul.mubr.bf16.vlgmr.msra.gmra.mrb[0].mxu1 %v94_v27 }
 0x12c   :  { %v331_v29 = vpop.f32.mrb[0].mxu0  ;;  %v335_v30 = vpop.f32.mrb[0].mxu1 }
 0x12d   :  { %v260_v31 = vadd.f32 %v331_v29, %v300_v28  ;;  %v264_v32 = vadd.f32 %v335_v30, %v300_v28  ;;  %v193_v33 = vpop.f32.mrb[1].mxu0  ;;  %v209_v34 = vpop.f32.mrb[1].mxu1 }
 0x12e   :  { %v258_v35 = vadd.f32 %v300_v28, %v193_v33  ;;  %v262_v36 = vadd.f32 %v300_v28, %v209_v34  ;;  %v332_v37 = vpop.f32.mrb[2].mxu0  ;;  %v336_v38 = vpop.f32.mrb[2].mxu1 }
 0x12f   :  { %268 = vst [vmem:[#allocation9 + $0x10] sm:$0xff] %v260_v31  ;;  %272 = vst [vmem:[#allocation9 + $0x30] sm:$0xff] %v264_v32  ;;  %v261_v39 = vadd.f32 %v332_v37, %v300_v28  ;;  %v265_v40 = vadd.f32 %v336_v38, %v300_v28  ;;  %v196_v41 = vpop.f32.mrb[3].mxu0  ;;  %v212_v42 = vpop.f32.mrb[3].mxu1 }
 0x130   :  { %266 = vst [vmem:[#allocation9] sm:$0xff] %v258_v35  ;;  %270 = vst [vmem:[#allocation9 + $0x20] sm:$0xff] %v262_v36  ;;  %v259_v43 = vadd.f32 %v300_v28, %v196_v41  ;;  %v263_v44 = vadd.f32 %v300_v28, %v212_v42 }
 0x131   :  { %269 = vst [vmem:[#allocation9 + $0x18] sm:$0xff] %v261_v39  ;;  %273 = vst [vmem:[#allocation9 + $0x38] sm:$0xff] %v265_v40 }
 0x132   :  { %267 = vst [vmem:[#allocation9 + $0x8] sm:$0xff] %v259_v43  ;;  %271 = vst [vmem:[#allocation9 + $0x28] sm:$0xff] %v263_v44 }
 0x133   :  { %446 = shalt.err (!%p443_p0)
}
 0x134   :  { %s447_s28 = scalar_lea.hbm %s548_s3, 1024 }
 0x135   :  { %p448_p1 = scmp.ne.s32.totalorder %s548_s3, %s447_s28  ;;  %p451_p2 = scmp.lt.u32.totalorder %s447_s28, %s548_s3 }
 0x137   :  { %p453_p3 = pnand %p451_p2, %p448_p1 }
 0x139   :  { %456 = shalt.err (!%p453_p3)
}
 0x13a   :  { %285 = dma.vmem_to_hbm [thread:$0]  %s280_s24, 1024, %s548_s3, [#allocation5], %s467_s1, %s467_s1, %s468_s9  }
 0x13b   :  { %461 = dma.done.wait [#allocation5], 1024  }
 0x13c   :  { %462 = vsyncadd [#allocation5], 4294966272 }
 0x13d   :  { %289 = vsyncpa [#allocation4], 1 }
 0x13e   :  { %290 = vsyncpa [#allocation7], 1 }
 0x13f   :  { %291 = vsyncpa [#allocation5], 1 }

// kernel: decoder_forward.5
= control target key start
LH: loop header
LB: loop body
LE: loop exit
PB: predicated region body
PF: predicated region fallthrough
CT: control target
= control target key end

     0   :  { %8 = vsyncpa [#allocation4], 0  ;;  %s988_s0 = inlined_call_operand.hbm [shape: f32[64,128], index: 0, kind: input, shape index: {}]   ;;  %s989_s1 = inlined_call_operand.hbm [shape: bf16[128,512], index: 1, kind: input, shape index: {}]   ;;  %s990_s2 = inlined_call_operand.hbm [shape: f32[1,512], index: 2, kind: input, shape index: {}]   ;;  %s991_s3 = inlined_call_operand.hbm [shape: f32[64,512], index: 3, kind: output, shape index: {}]  }
   0x1   :  { %9 = vsyncpa [#allocation7], 0 }
   0x2   :  { %10 = vsyncpa [#allocation5], 0  ;;  %s861_s12 = smov [#allocation6]   ;;  %s767_s16 = scalar_lea.hbm %s989_s1, 4096 }
   0x3   :  { %s28_s13 = sshll.u32 %s861_s12, 4  ;;  %p768_p0 = scmp.ne.s32.totalorder %s989_s1, %s767_s16  ;;  %s29_s13 = int_to_ptr.vmem [resolvable:$true] %s28_s13 }
   0x4   :  { %p771_p1 = scmp.lt.u32.totalorder %s767_s16, %s989_s1 }
   0x6   :  { %p773_p2 = pnand %p771_p1, %p768_p0 }
   0x8   :  { %776 = shalt.err (!%p773_p2)
}
   0x9   :  { %s777_s21 = scalar_lea.vmem %s29_s13, 4096  ;;  %p782_p4 = scmp.lt.s32.totalorder %s29_s13, %s29_s13 }
   0xa   :  { %p778_p3 = scmp.ne.s32.totalorder %s29_s13, %s777_s21  ;;  %p783_p5 = scmp.lt.s32.totalorder %s777_s21, %s777_s21 }
   0xc   :  { %p784_p6 = por %p783_p5, %p782_p4 }
   0xe   :  { %p785_p7 = pnand %p784_p6, %p778_p3 }
  0x10   :  { %788 = shalt.err (!%p785_p7)
}
  0x11   :  { %s862_s22 = smov 256   ;;  %s863_s23 = smov 16  }
  0x12   :  { %34 = dma.hbm_to_vmem [thread:$0]  %s989_s1, 4096, %s29_s13, [#allocation7], %s862_s22, %s862_s22, %s863_s23  }
  0x13   :  { %s864_s26 = smov [#allocation3]   ;;  %s789_s30 = scalar_lea.hbm %s988_s0, 1024 }
  0x14   :  { %s16_s27 = sshll.u32 %s864_s26, 4  ;;  %p790_p8 = scmp.ne.s32.totalorder %s988_s0, %s789_s30  ;;  %s17_s27 = int_to_ptr.vmem [resolvable:$true] %s16_s27 }
  0x15   :  { %p793_p9 = scmp.lt.u32.totalorder %s789_s30, %s988_s0 }
  0x17   :  { %p795_p10 = pnand %p793_p9, %p790_p8 }
  0x19   :  { %798 = shalt.err (!%p795_p10)
}
  0x1a   :  { %s799_s8 = scalar_lea.vmem %s17_s27, 1024  ;;  %p804_p12 = scmp.lt.s32.totalorder %s17_s27, %s17_s27 }
  0x1b   :  { %p800_p11 = scmp.ne.s32.totalorder %s17_s27, %s799_s8  ;;  %p805_p13 = scmp.lt.s32.totalorder %s799_s8, %s799_s8 }
  0x1d   :  { %p806_p0 = por %p805_p13, %p804_p12 }
  0x1f   :  { %p807_p1 = pnand %p806_p0, %p800_p11 }
  0x21   :  { %810 = shalt.err (!%p807_p1)
}
  0x22   :  { %s865_s1 = smov 128   ;;  %s866_s9 = smov 8  }
  0x23   :  { %22 = dma.hbm_to_vmem [thread:$0]  %s988_s0, 1024, %s17_s27, [#allocation4], %s865_s1, %s865_s1, %s866_s9  }
  0x24   :  { %s867_s12 = smov [#allocation8]   ;;  %s811_s16 = scalar_lea.hbm %s990_s2, 64 }
  0x25   :  { %s41_s13 = sshll.u32 %s867_s12, 4  ;;  %p812_p2 = scmp.ne.s32.totalorder %s990_s2, %s811_s16  ;;  %s42_s13 = int_to_ptr.vmem [resolvable:$true] %s41_s13 }
  0x26   :  { %p815_p3 = scmp.lt.u32.totalorder %s811_s16, %s990_s2 }
  0x28   :  { %p817_p4 = pnand %p815_p3, %p812_p2 }
  0x2a   :  { %820 = shalt.err (!%p817_p4)
}
  0x2b   :  { %s821_s21 = scalar_lea.vmem %s42_s13, 64  ;;  %p826_p6 = scmp.lt.s32.totalorder %s42_s13, %s42_s13 }
  0x2c   :  { %p822_p5 = scmp.ne.s32.totalorder %s42_s13, %s821_s21  ;;  %p827_p7 = scmp.lt.s32.totalorder %s821_s21, %s821_s21 }
  0x2e   :  { %p828_p8 = por %p827_p7, %p826_p6 }
  0x30   :  { %p829_p9 = pnand %p828_p8, %p822_p5 }
  0x32   :  { %832 = shalt.err (!%p829_p9)
}
  0x33   :  { %44 = dma.hbm_to_vmem [thread:$0]  %s990_s2, 64, %s42_s13, [#allocation7]  }
  0x34   :  { %855 = dma.done.wait [#allocation4], 1024  }
  0x35   :  { %856 = vsyncadd [#allocation4], 4294966272 }
  0x36   :  { %857 = dma.done.wait [#allocation7], 4160  }
  0x37   :  { %858 = vsyncadd [#allocation7], 4294963136  ;;  %v868_v0 = vmov 0   ;;  %v719_v1 = vld [vmem:[#allocation6 + $0x4] ss:$16 sps:$4 sm:$0xff]   ;;  %v92_v34 = vld [vmem:[#allocation3 + $0x8] sm:$0xff]  ;;  %v574_v45 = vlaneseq }
  0x38   :  { %359 = vmatprep.mubr.bf16.mxu0 %v868_v0  ;;  %432 = vmatprep.mubr.bf16.mxu1 %v868_v0  ;;  %v721_v2 = vld [vmem:[#allocation6 + $0xc] ss:$16 sps:$4 sm:$0xff]   ;;  %v723_v3 = vld [vmem:[#allocation6] ss:$16 sps:$4 sm:$0xff]   ;;  %v724_v4 = vld [vmem:[#allocation6 + $0x8] ss:$16 sps:$4 sm:$0xff]  }
  0x39   :  { %327 = vmatprep.subr.bf16.mxu0 %v719_v1  ;;  %400 = vmatprep.subr.bf16.mxu1 %v721_v2  ;;  %v725_v5 = vld [vmem:[#allocation6 + $0x24] ss:$16 sps:$4 sm:$0xff]   ;;  %v727_v6 = vld [vmem:[#allocation6 + $0x2c] ss:$16 sps:$4 sm:$0xff]   ;;  %v729_v7 = vld [vmem:[#allocation6 + $0x20] ss:$16 sps:$4 sm:$0xff]  }
  0x3a   :  { %328 = vmatpush1.bf16.msra.mxu0 %v723_v3  ;;  %401 = vmatpush1.bf16.msra.mxu1 %v724_v4  ;;  %v730_v8 = vld [vmem:[#allocation6 + $0x28] ss:$16 sps:$4 sm:$0xff]   ;;  %v731_v9 = vld [vmem:[#allocation6 + $0x44] ss:$16 sps:$4 sm:$0xff]   ;;  %v733_v10 = vld [vmem:[#allocation6 + $0x4c] ss:$16 sps:$4 sm:$0xff]  }
  0x3b   :  { %329 = vmatprep.subr.bf16.mxu0 %v725_v5  ;;  %402 = vmatprep.subr.bf16.mxu1 %v727_v6  ;;  %v735_v11 = vld [vmem:[#allocation6 + $0x40] ss:$16 sps:$4 sm:$0xff]   ;;  %v736_v12 = vld [vmem:[#allocation6 + $0x48] ss:$16 sps:$4 sm:$0xff]   ;;  %v737_v13 = vld [vmem:[#allocation6 + $0x64] ss:$16 sps:$4 sm:$0xff]  }
  0x3c   :  { %v739_v14 = vld [vmem:[#allocation6 + $0x6c] ss:$16 sps:$4 sm:$0xff]   ;;  %v741_v15 = vld [vmem:[#allocation6 + $0x60] ss:$16 sps:$4 sm:$0xff]   ;;  %v742_v16 = vld [vmem:[#allocation6 + $0x68] ss:$16 sps:$4 sm:$0xff]  }
  0x3d   :  { %v743_v17 = vld [vmem:[#allocation6 + $0x84] ss:$16 sps:$4 sm:$0xff]   ;;  %v745_v18 = vld [vmem:[#allocation6 + $0x8c] ss:$16 sps:$4 sm:$0xff]   ;;  %v747_v19 = vld [vmem:[#allocation6 + $0x80] ss:$16 sps:$4 sm:$0xff]  }
  0x3e   :  { %330 = vmatpush1.bf16.msra.mxu0 %v729_v7  ;;  %403 = vmatpush1.bf16.msra.mxu1 %v730_v8  ;;  %v748_v20 = vld [vmem:[#allocation6 + $0x88] ss:$16 sps:$4 sm:$0xff]   ;;  %v749_v21 = vld [vmem:[#allocation6 + $0xa4] ss:$16 sps:$4 sm:$0xff]   ;;  %v751_v22 = vld [vmem:[#allocation6 + $0xac] ss:$16 sps:$4 sm:$0xff]  }
  0x3f   :  { %331 = vmatprep.subr.bf16.mxu0 %v731_v9  ;;  %404 = vmatprep.subr.bf16.mxu1 %v733_v10  ;;  %v753_v23 = vld [vmem:[#allocation6 + $0xa0] ss:$16 sps:$4 sm:$0xff]   ;;  %v754_v24 = vld [vmem:[#allocation6 + $0xa8] ss:$16 sps:$4 sm:$0xff]   ;;  %v755_v25 = vld [vmem:[#allocation6 + $0xc4] ss:$16 sps:$4 sm:$0xff]  }
  0x40   :  { %v757_v26 = vld [vmem:[#allocation6 + $0xcc] ss:$16 sps:$4 sm:$0xff]   ;;  %v759_v27 = vld [vmem:[#allocation6 + $0xc0] ss:$16 sps:$4 sm:$0xff]   ;;  %v760_v28 = vld [vmem:[#allocation6 + $0xc8] ss:$16 sps:$4 sm:$0xff]  }
  0x41   :  { %v761_v29 = vld [vmem:[#allocation6 + $0xe4] ss:$16 sps:$4 sm:$0xff]   ;;  %v763_v30 = vld [vmem:[#allocation6 + $0xec] ss:$16 sps:$4 sm:$0xff]   ;;  %v765_v31 = vld [vmem:[#allocation6 + $0xe0] ss:$16 sps:$4 sm:$0xff]  }
  0x42   :  { %332 = vmatpush1.bf16.msra.mxu0 %v735_v11  ;;  %405 = vmatpush1.bf16.msra.mxu1 %v736_v12  ;;  %v766_v32 = vld [vmem:[#allocation6 + $0xe8] ss:$16 sps:$4 sm:$0xff]   ;;  %v91_v33 = vld [vmem:[#allocation3] sm:$0xff]  ;;  %v93_v36 = vld [vmem:[#allocation3 + $0x10] sm:$0xff]  ;;  %v575_v46 = vshrl.u32 %v574_v45, 7  ;;  %s869_s2 = smov [#allocation9]  }
  0x43   :  { %333 = vmatprep.subr.bf16.mxu0 %v737_v13  ;;  %406 = vmatprep.subr.bf16.mxu1 %v739_v14  ;;  %v131_v35 = vpack.c.bf16 %v92_v34, %v91_v33  ;;  %v94_v37 = vld [vmem:[#allocation3 + $0x18] sm:$0xff]  ;;  %v95_v39 = vld [vmem:[#allocation3 + $0x20] sm:$0xff]  ;;  %v96_v40 = vld [vmem:[#allocation3 + $0x28] sm:$0xff]  ;;  %s663_s23 = sshll.u32 %s869_s2, 4  ;;  %s664_s23 = int_to_ptr.vmem [resolvable:$true] %s663_s23 }
  0x44   :  { %v132_v38 = vpack.c.bf16 %v94_v37, %v93_v36  ;;  %v133_v41 = vpack.c.bf16 %v96_v40, %v95_v39  ;;  %v97_v42 = vld [vmem:[#allocation3 + $0x30] sm:$0xff]  ;;  %v98_v43 = vld [vmem:[#allocation3 + $0x38] sm:$0xff]  ;;  %v576_v47 = vsub.s32 0, %v575_v46  ;;  %v584_v48 = vsub.s32 2, %v575_v46  ;;  %v572_v49 = vld [vmem:[#allocation8] sm:$0xf]  ;;  %p838_p11 = scmp.lt.s32.totalorder %s664_s23, %s664_s23 }
  0x45   :  { %v134_v44 = vpack.c.bf16 %v98_v43, %v97_v42  ;;  %v580_v50 = vsub.s32 1, %v575_v46  ;;  %v588_v51 = vsub.s32 3, %v575_v46  ;;  %s833_s24 = scalar_lea.vmem %s664_s23, 4096 }
  0x46   :  { %334 = vmatpush1.bf16.msra.mxu0 %v741_v15  ;;  %407 = vmatpush1.bf16.msra.mxu1 %v742_v16  ;;  %v936_v52 = vrot.slane %v572_v49, %v576_v47  ;;  %v938_v53 = vrot.slane %v572_v49, %v584_v48  ;;  %p834_p10 = scmp.ne.s32.totalorder %s664_s23, %s833_s24  ;;  %p839_p12 = scmp.lt.s32.totalorder %s833_s24, %s833_s24 }
  0x47   :  { %335 = vmatprep.subr.bf16.mxu0 %v743_v17  ;;  %408 = vmatprep.subr.bf16.mxu1 %v745_v18  ;;  %v940_v54 = vrot.slane %v572_v49, %v580_v50  ;;  %v942_v55 = vrot.slane %v572_v49, %v588_v51 }
  0x48   :  { %p840_p13 = por %p839_p12, %p838_p11 }
  0x4a   :  { %336 = vmatpush1.bf16.msra.mxu0 %v747_v19  ;;  %409 = vmatpush1.bf16.msra.mxu1 %v748_v20  ;;  %p841_p0 = pnand %p840_p13, %p834_p10 }
  0x4b   :  { %337 = vmatprep.subr.bf16.mxu0 %v749_v21  ;;  %410 = vmatprep.subr.bf16.mxu1 %v751_v22 }
  0x4e   :  { %338 = vmatpush1.bf16.msra.mxu0 %v753_v23  ;;  %411 = vmatpush1.bf16.msra.mxu1 %v754_v24 }
  0x4f   :  { %339 = vmatprep.subr.bf16.mxu0 %v755_v25  ;;  %412 = vmatprep.subr.bf16.mxu1 %v757_v26 }
  0x52   :  { %340 = vmatpush1.bf16.msra.mxu0 %v759_v27  ;;  %413 = vmatpush1.bf16.msra.mxu1 %v760_v28 }
  0x53   :  { %341 = vmatprep.subr.bf16.mxu0 %v761_v29  ;;  %414 = vmatprep.subr.bf16.mxu1 %v763_v30 }
  0x56   :  { %342 = vmatpush1.bf16.msra.mxu0 %v765_v31  ;;  %415 = vmatpush1.bf16.msra.mxu1 %v766_v32 }
  0x59   :  { %360 = vmatmul.mubr.bf16.vlgmr.msra.gmra.mrb[0].mxu0 %v131_v35  ;;  %433 = vmatmul.mubr.bf16.vlgmr.msra.gmra.mrb[0].mxu1 %v131_v35 }
  0x5a   :  { %369 = vmatprep.mubr.bf16.mxu0 %v868_v0  ;;  %442 = vmatprep.mubr.bf16.mxu1 %v868_v0 }
  0x61   :  { %370 = vmatmul.mubr.bf16.gmra.mrb[4].mxu0 %v132_v38  ;;  %443 = vmatmul.mubr.bf16.gmra.mrb[4].mxu1 %v132_v38 }
  0x62   :  { %379 = vmatprep.mubr.bf16.mxu0 %v868_v0  ;;  %452 = vmatprep.mubr.bf16.mxu1 %v868_v0 }
  0x69   :  { %380 = vmatmul.mubr.bf16.gmra.mrb[8].mxu0 %v133_v41  ;;  %453 = vmatmul.mubr.bf16.gmra.mrb[8].mxu1 %v133_v41 }
  0x6a   :  { %389 = vmatprep.mubr.bf16.mxu0 %v868_v0  ;;  %462 = vmatprep.mubr.bf16.mxu1 %v868_v0 }
  0x71   :  { %390 = vmatmul.mubr.bf16.gmra.mrb[12].mxu0 %v134_v44  ;;  %463 = vmatmul.mubr.bf16.gmra.mrb[12].mxu1 %v134_v44 }
 0x12c   :  { %v361_v56 = vpop.f32.mrb[0].mxu0  ;;  %v434_v57 = vpop.f32.mrb[0].mxu1 }
 0x12d   :  { %v594_v58 = vadd.f32 %v936_v52, %v361_v56  ;;  %v596_v59 = vadd.f32 %v938_v53, %v434_v57  ;;  %v363_v60 = vpop.f32.mrb[1].mxu0  ;;  %v436_v61 = vpop.f32.mrb[1].mxu1 }
 0x12e   :  { %v595_v62 = vadd.f32 %v940_v54, %v363_v60  ;;  %v597_v63 = vadd.f32 %v942_v55, %v436_v61  ;;  %v365_v0 = vpop.f32.mrb[2].mxu0  ;;  %v438_v1 = vpop.f32.mrb[2].mxu1 }
 0x12f   :  { %626 = vst [vmem:[#allocation9] sm:$0xff] %v594_v58  ;;  %628 = vst [vmem:[#allocation9 + $0x10] sm:$0xff] %v596_v59  ;;  %v598_v2 = vadd.f32 %v936_v52, %v365_v0  ;;  %v600_v3 = vadd.f32 %v938_v53, %v438_v1  ;;  %v367_v4 = vpop.f32.mrb[3].mxu0  ;;  %v440_v5 = vpop.f32.mrb[3].mxu1 }
 0x130   :  { %627 = vst [vmem:[#allocation9 + $0x8] sm:$0xff] %v595_v62  ;;  %629 = vst [vmem:[#allocation9 + $0x18] sm:$0xff] %v597_v63  ;;  %v599_v6 = vadd.f32 %v940_v54, %v367_v4  ;;  %v601_v7 = vadd.f32 %v942_v55, %v440_v5 }
 0x131   :  { %630 = vst [vmem:[#allocation9 + $0x20] sm:$0xff] %v598_v2  ;;  %632 = vst [vmem:[#allocation9 + $0x30] sm:$0xff] %v600_v3 }
 0x132   :  { %631 = vst [vmem:[#allocation9 + $0x28] sm:$0xff] %v599_v6  ;;  %633 = vst [vmem:[#allocation9 + $0x38] sm:$0xff] %v601_v7 }
 0x134   :  { %v371_v8 = vpop.f32.mrb[4].mxu0  ;;  %v444_v9 = vpop.f32.mrb[4].mxu1 }
 0x135   :  { %v602_v10 = vadd.f32 %v936_v52, %v371_v8  ;;  %v604_v11 = vadd.f32 %v938_v53, %v444_v9  ;;  %v373_v12 = vpop.f32.mrb[5].mxu0  ;;  %v446_v13 = vpop.f32.mrb[5].mxu1 }
 0x136   :  { %v603_v14 = vadd.f32 %v940_v54, %v373_v12  ;;  %v605_v15 = vadd.f32 %v942_v55, %v446_v13  ;;  %v375_v16 = vpop.f32.mrb[6].mxu0  ;;  %v448_v17 = vpop.f32.mrb[6].mxu1 }
 0x137   :  { %634 = vst [vmem:[#allocation9 + $0x40] sm:$0xff] %v602_v10  ;;  %636 = vst [vmem:[#allocation9 + $0x50] sm:$0xff] %v604_v11  ;;  %v606_v18 = vadd.f32 %v936_v52, %v375_v16  ;;  %v608_v19 = vadd.f32 %v938_v53, %v448_v17  ;;  %v377_v20 = vpop.f32.mrb[7].mxu0  ;;  %v450_v21 = vpop.f32.mrb[7].mxu1 }
 0x138   :  { %635 = vst [vmem:[#allocation9 + $0x48] sm:$0xff] %v603_v14  ;;  %637 = vst [vmem:[#allocation9 + $0x58] sm:$0xff] %v605_v15  ;;  %v607_v22 = vadd.f32 %v940_v54, %v377_v20  ;;  %v609_v23 = vadd.f32 %v942_v55, %v450_v21 }
 0x139   :  { %638 = vst [vmem:[#allocation9 + $0x60] sm:$0xff] %v606_v18  ;;  %640 = vst [vmem:[#allocation9 + $0x70] sm:$0xff] %v608_v19 }
 0x13a   :  { %639 = vst [vmem:[#allocation9 + $0x68] sm:$0xff] %v607_v22  ;;  %641 = vst [vmem:[#allocation9 + $0x78] sm:$0xff] %v609_v23 }
 0x13c   :  { %v381_v24 = vpop.f32.mrb[8].mxu0  ;;  %v454_v25 = vpop.f32.mrb[8].mxu1 }
 0x13d   :  { %v610_v26 = vadd.f32 %v936_v52, %v381_v24  ;;  %v612_v27 = vadd.f32 %v938_v53, %v454_v25  ;;  %v383_v28 = vpop.f32.mrb[9].mxu0  ;;  %v456_v29 = vpop.f32.mrb[9].mxu1 }
 0x13e   :  { %v611_v30 = vadd.f32 %v940_v54, %v383_v28  ;;  %v613_v31 = vadd.f32 %v942_v55, %v456_v29  ;;  %v385_v32 = vpop.f32.mrb[10].mxu0  ;;  %v458_v33 = vpop.f32.mrb[10].mxu1 }
 0x13f   :  { %642 = vst [vmem:[#allocation9 + $0x80] sm:$0xff] %v610_v26  ;;  %644 = vst [vmem:[#allocation9 + $0x90] sm:$0xff] %v612_v27  ;;  %v614_v34 = vadd.f32 %v936_v52, %v385_v32  ;;  %v616_v35 = vadd.f32 %v938_v53, %v458_v33  ;;  %v387_v36 = vpop.f32.mrb[11].mxu0  ;;  %v460_v37 = vpop.f32.mrb[11].mxu1 }
 0x140   :  { %643 = vst [vmem:[#allocation9 + $0x88] sm:$0xff] %v611_v30  ;;  %645 = vst [vmem:[#allocation9 + $0x98] sm:$0xff] %v613_v31  ;;  %v615_v38 = vadd.f32 %v940_v54, %v387_v36  ;;  %v617_v39 = vadd.f32 %v942_v55, %v460_v37 }
 0x141   :  { %646 = vst [vmem:[#allocation9 + $0xa0] sm:$0xff] %v614_v34  ;;  %648 = vst [vmem:[#allocation9 + $0xb0] sm:$0xff] %v616_v35 }
 0x142   :  { %647 = vst [vmem:[#allocation9 + $0xa8] sm:$0xff] %v615_v38  ;;  %649 = vst [vmem:[#allocation9 + $0xb8] sm:$0xff] %v617_v39 }
 0x144   :  { %v391_v40 = vpop.f32.mrb[12].mxu0  ;;  %v464_v41 = vpop.f32.mrb[12].mxu1 }
 0x145   :  { %v618_v42 = vadd.f32 %v936_v52, %v391_v40  ;;  %v620_v43 = vadd.f32 %v938_v53, %v464_v41  ;;  %v393_v44 = vpop.f32.mrb[13].mxu0  ;;  %v466_v45 = vpop.f32.mrb[13].mxu1 }
 0x146   :  { %v619_v46 = vadd.f32 %v940_v54, %v393_v44  ;;  %v621_v47 = vadd.f32 %v942_v55, %v466_v45  ;;  %v395_v48 = vpop.f32.mrb[14].mxu0  ;;  %v468_v49 = vpop.f32.mrb[14].mxu1 }
 0x147   :  { %650 = vst [vmem:[#allocation9 + $0xc0] sm:$0xff] %v618_v42  ;;  %652 = vst [vmem:[#allocation9 + $0xd0] sm:$0xff] %v620_v43  ;;  %v622_v50 = vadd.f32 %v936_v52, %v395_v48  ;;  %v624_v51 = vadd.f32 %v938_v53, %v468_v49  ;;  %v397_v56 = vpop.f32.mrb[15].mxu0  ;;  %v470_v57 = vpop.f32.mrb[15].mxu1 }
 0x148   :  { %651 = vst [vmem:[#allocation9 + $0xc8] sm:$0xff] %v619_v46  ;;  %653 = vst [vmem:[#allocation9 + $0xd8] sm:$0xff] %v621_v47  ;;  %v623_v58 = vadd.f32 %v940_v54, %v397_v56  ;;  %v625_v59 = vadd.f32 %v942_v55, %v470_v57 }
 0x149   :  { %654 = vst [vmem:[#allocation9 + $0xe0] sm:$0xff] %v622_v50  ;;  %656 = vst [vmem:[#allocation9 + $0xf0] sm:$0xff] %v624_v51 }
 0x14a   :  { %655 = vst [vmem:[#allocation9 + $0xe8] sm:$0xff] %v623_v58  ;;  %657 = vst [vmem:[#allocation9 + $0xf8] sm:$0xff] %v625_v59 }
 0x14b   :  { %844 = shalt.err (!%p841_p0)
}
 0x14c   :  { %s845_s27 = scalar_lea.hbm %s991_s3, 4096 }
 0x14d   :  { %p846_p1 = scmp.ne.s32.totalorder %s991_s3, %s845_s27  ;;  %p849_p2 = scmp.lt.u32.totalorder %s845_s27, %s991_s3 }
 0x14f   :  { %p851_p3 = pnand %p849_p2, %p846_p1 }
 0x151   :  { %854 = shalt.err (!%p851_p3)
}
 0x152   :  { %s870_s5 = smov 512   ;;  %s871_s6 = smov 32  }
 0x153   :  { %669 = dma.vmem_to_hbm [thread:$0]  %s664_s23, 4096, %s991_s3, [#allocation5], %s870_s5, %s870_s5, %s871_s6  }
 0x154   :  { %859 = dma.done.wait [#allocation5], 4096  }
 0x155   :  { %860 = vsyncadd [#allocation5], 4294963200 }
 0x156   :  { %673 = vsyncpa [#allocation4], 1 }
 0x157   :  { %674 = vsyncpa [#allocation7], 1 }
 0x158   :  { %675 = vsyncpa [#allocation5], 1 }

// kernel: decoder_forward.6
= control target key start
LH: loop header
LB: loop body
LE: loop exit
PB: predicated region body
PF: predicated region fallthrough
CT: control target
= control target key end

     0   :  { %12 = vsyncpa [#allocation5], 0  ;;  %s3868_s0 = inlined_call_operand.hbm [shape: f32[8,8,512], index: 0, kind: input, shape index: {}]   ;;  %s3869_s1 = inlined_call_operand.hbm [shape: bf16[128,512], index: 1, kind: input, shape index: {}]   ;;  %s3870_s2 = inlined_call_operand.hbm [shape: f32[8,128], index: 2, kind: input, shape index: {}]   ;;  %s3871_s3 = inlined_call_operand.hbm [shape: f32[8,128], index: 3, kind: input, shape index: {}]   ;;  %s3872_s4 = inlined_call_operand.hbm [shape: f32[8,8,128], index: 4, kind: output, shape index: {0}]   ;;  %s3873_s5 = inlined_call_operand.hbm [shape: f32[8,128], index: 5, kind: output, shape index: {1}]   ;;  %s3874_s6 = inlined_call_operand.hbm [shape: f32[8,128], index: 6, kind: output, shape index: {2}]  }
   0x1   :  { %13 = vsyncpa [#allocation8], 0 }
   0x2   :  { %14 = vsyncpa [#allocation11], 0 }
   0x3   :  { %15 = vsyncpa [#allocation6], 0 }
   0x4   :  { %16 = vsyncpa [#allocation14], 0  ;;  %s3297_s21 = smov [#allocation7]   ;;  %s3133_s25 = scalar_lea.hbm %s3869_s1, 4096 }
   0x5   :  { %s34_s22 = sshll.u32 %s3297_s21, 4  ;;  %p3134_p0 = scmp.ne.s32.totalorder %s3869_s1, %s3133_s25  ;;  %s35_s22 = int_to_ptr.vmem [resolvable:$true] %s34_s22 }
   0x6   :  { %p3137_p1 = scmp.lt.u32.totalorder %s3133_s25, %s3869_s1 }
   0x8   :  { %p3139_p2 = pnand %p3137_p1, %p3134_p0 }
   0xa   :  { %3142 = shalt.err (!%p3139_p2)
}
   0xb   :  { %s3143_s30 = scalar_lea.vmem %s35_s22, 4096  ;;  %p3148_p4 = scmp.lt.s32.totalorder %s35_s22, %s35_s22 }
   0xc   :  { %p3144_p3 = scmp.ne.s32.totalorder %s35_s22, %s3143_s30  ;;  %p3149_p5 = scmp.lt.s32.totalorder %s3143_s30, %s3143_s30 }
   0xe   :  { %p3150_p6 = por %p3149_p5, %p3148_p4 }
  0x10   :  { %p3151_p7 = pnand %p3150_p6, %p3144_p3 }
  0x12   :  { %3154 = shalt.err (!%p3151_p7)
}
  0x13   :  { %s3298_s7 = smov 256   ;;  %s3299_s8 = smov 16  }
  0x14   :  { %40 = dma.hbm_to_vmem [thread:$0]  %s3869_s1, 4096, %s35_s22, [#allocation8], %s3298_s7, %s3298_s7, %s3299_s8  }
  0x15   :  { %s3300_s11 = smov [#allocation4]   ;;  %s3155_s15 = scalar_lea.hbm %s3868_s0, 4096 }
  0x16   :  { %s22_s12 = sshll.u32 %s3300_s11, 4  ;;  %p3156_p8 = scmp.ne.s32.totalorder %s3868_s0, %s3155_s15  ;;  %s23_s12 = int_to_ptr.vmem [resolvable:$true] %s22_s12 }
  0x17   :  { %p3159_p9 = scmp.lt.u32.totalorder %s3155_s15, %s3868_s0 }
  0x19   :  { %p3161_p10 = pnand %p3159_p9, %p3156_p8 }
  0x1b   :  { %3164 = shalt.err (!%p3161_p10)
}
  0x1c   :  { %s3165_s20 = scalar_lea.vmem %s23_s12, 4096  ;;  %p3170_p12 = scmp.lt.s32.totalorder %s23_s12, %s23_s12 }
  0x1d   :  { %p3166_p11 = scmp.ne.s32.totalorder %s23_s12, %s3165_s20  ;;  %p3171_p13 = scmp.lt.s32.totalorder %s3165_s20, %s3165_s20 }
  0x1f   :  { %p3172_p0 = por %p3171_p13, %p3170_p12 }
  0x21   :  { %p3173_p1 = pnand %p3172_p0, %p3166_p11 }
  0x23   :  { %3176 = shalt.err (!%p3173_p1)
}
  0x24   :  { %s3301_s1 = smov 512   ;;  %s3302_s21 = smov 32  }
  0x25   :  { %28 = dma.hbm_to_vmem [thread:$0]  %s3868_s0, 4096, %s23_s12, [#allocation5], %s3301_s1, %s3301_s1, %s3302_s21  }
  0x26   :  { %s3303_s24 = smov [#allocation9]   ;;  %s3304_s26 = smov [#allocation10]  }
  0x27   :  { %s47_s25 = sshll.u32 %s3303_s24, 4  ;;  %s57_s27 = sshll.u32 %s3304_s26, 4  ;;  %s48_s25 = int_to_ptr.vmem [resolvable:$true] %s47_s25  ;;  %s58_s27 = int_to_ptr.vmem [resolvable:$true] %s57_s27 }
  0x28   :  { %s3177_s30 = scalar_lea.hbm %s3870_s2, 128 }
  0x29   :  { %p3178_p2 = scmp.ne.s32.totalorder %s3870_s2, %s3177_s30  ;;  %p3181_p3 = scmp.lt.u32.totalorder %s3177_s30, %s3870_s2 }
  0x2b   :  { %p3183_p4 = pnand %p3181_p3, %p3178_p2 }
  0x2d   :  { %3186 = shalt.err (!%p3183_p4)
}
  0x2e   :  { %s3187_s0 = scalar_lea.vmem %s48_s25, 128  ;;  %p3192_p6 = scmp.lt.s32.totalorder %s48_s25, %s48_s25 }
  0x2f   :  { %p3188_p5 = scmp.ne.s32.totalorder %s48_s25, %s3187_s0  ;;  %p3193_p7 = scmp.lt.s32.totalorder %s3187_s0, %s3187_s0 }
  0x31   :  { %p3194_p8 = por %p3193_p7, %p3192_p6 }
  0x33   :  { %p3195_p9 = pnand %p3194_p8, %p3188_p5 }
  0x35   :  { %3198 = shalt.err (!%p3195_p9)
}
  0x36   :  { %50 = dma.hbm_to_vmem [thread:$0]  %s3870_s2, 128, %s48_s25, [#allocation8]  }
  0x37   :  { %s3199_s15 = scalar_lea.hbm %s3871_s3, 128 }
  0x38   :  { %p3200_p10 = scmp.ne.s32.totalorder %s3871_s3, %s3199_s15  ;;  %p3203_p11 = scmp.lt.u32.totalorder %s3199_s15, %s3871_s3 }
  0x3a   :  { %p3205_p12 = pnand %p3203_p11, %p3200_p10 }
  0x3c   :  { %3208 = shalt.err (!%p3205_p12)
}
  0x3d   :  { %s3209_s20 = scalar_lea.vmem %s58_s27, 128  ;;  %p3214_p0 = scmp.lt.s32.totalorder %s58_s27, %s58_s27 }
  0x3e   :  { %p3210_p13 = scmp.ne.s32.totalorder %s58_s27, %s3209_s20  ;;  %p3215_p1 = scmp.lt.s32.totalorder %s3209_s20, %s3209_s20 }
  0x40   :  { %p3216_p2 = por %p3215_p1, %p3214_p0 }
  0x42   :  { %p3217_p3 = pnand %p3216_p2, %p3210_p13 }
  0x44   :  { %3220 = shalt.err (!%p3217_p3)
}
  0x45   :  { %60 = dma.hbm_to_vmem [thread:$0]  %s3871_s3, 128, %s58_s27, [#allocation11]  }
  0x46   :  { %3287 = dma.done.wait [#allocation5], 4096  }
  0x47   :  { %3288 = vsyncadd [#allocation5], 4294963200 }
  0x48   :  { %3289 = dma.done.wait [#allocation8], 4224  }
  0x49   :  { %3290 = vsyncadd [#allocation8], 4294963072 }
  0x4a   :  { %3291 = dma.done.wait [#allocation11], 128  }
  0x4b   :  { %3292 = vsyncadd [#allocation11], 4294967168  ;;  %v3305_v0 = vmov 0   ;;  %v3396_v1 = vld [vmem:[#allocation7 + $0x4] ss:$16 sps:$4 sm:$0xff]   ;;  %v85_v36 = vld [vmem:[#allocation4 + $0x8] sm:$0xff] }
  0x4c   :  { %313 = vmatprep.mubr.bf16.mxu0 %v3305_v0  ;;  %354 = vmatprep.mubr.bf16.mxu1 %v3305_v0  ;;  %v3398_v2 = vld [vmem:[#allocation7] ss:$16 sps:$4 sm:$0xff]   ;;  %v3401_v3 = vld [vmem:[#allocation7 + $0x24] ss:$16 sps:$4 sm:$0xff]   ;;  %v3409_v6 = vld [vmem:[#allocation7 + $0xc] ss:$16 sps:$4 sm:$0xff]  }
  0x4d   :  { %281 = vmatprep.subr.bf16.mxu0 %v3396_v1  ;;  %v3404_v4 = vld [vmem:[#allocation7 + $0x20] ss:$16 sps:$4 sm:$0xff]   ;;  %v3407_v5 = vld [vmem:[#allocation7 + $0x44] ss:$16 sps:$4 sm:$0xff]   ;;  %v3411_v7 = vld [vmem:[#allocation7 + $0x8] ss:$16 sps:$4 sm:$0xff]   ;;  %322 = vmatprep.subr.bf16.mxu1 %v3409_v6 }
  0x4e   :  { %282 = vmatpush1.bf16.msra.mxu0 %v3398_v2  ;;  %v3414_v8 = vld [vmem:[#allocation7 + $0x40] ss:$16 sps:$4 sm:$0xff]   ;;  %v3418_v9 = vld [vmem:[#allocation7 + $0x64] ss:$16 sps:$4 sm:$0xff]   ;;  %323 = vmatpush1.bf16.msra.mxu1 %v3411_v7  ;;  %v3421_v10 = vld [vmem:[#allocation7 + $0x2c] ss:$16 sps:$4 sm:$0xff]  }
  0x4f   :  { %283 = vmatprep.subr.bf16.mxu0 %v3401_v3  ;;  %v3423_v11 = vld [vmem:[#allocation7 + $0x28] ss:$16 sps:$4 sm:$0xff]   ;;  %324 = vmatprep.subr.bf16.mxu1 %v3421_v10  ;;  %v3427_v12 = vld [vmem:[#allocation7 + $0x60] ss:$16 sps:$4 sm:$0xff]   ;;  %v3429_v13 = vld [vmem:[#allocation7 + $0x84] ss:$16 sps:$4 sm:$0xff]  }
  0x50   :  { %v3431_v14 = vld [vmem:[#allocation7 + $0x4c] ss:$16 sps:$4 sm:$0xff]   ;;  %v3435_v15 = vld [vmem:[#allocation7 + $0x48] ss:$16 sps:$4 sm:$0xff]   ;;  %v3441_v17 = vld [vmem:[#allocation7 + $0x80] ss:$16 sps:$4 sm:$0xff]  }
  0x51   :  { %v3438_v16 = vld [vmem:[#allocation7 + $0x6c] ss:$16 sps:$4 sm:$0xff]   ;;  %v3444_v18 = vld [vmem:[#allocation7 + $0xa4] ss:$16 sps:$4 sm:$0xff]   ;;  %v3447_v19 = vld [vmem:[#allocation7 + $0x68] ss:$16 sps:$4 sm:$0xff]  }
  0x52   :  { %284 = vmatpush1.bf16.msra.mxu0 %v3404_v4  ;;  %325 = vmatpush1.bf16.msra.mxu1 %v3423_v11  ;;  %v3450_v20 = vld [vmem:[#allocation7 + $0x8c] ss:$16 sps:$4 sm:$0xff]   ;;  %v3452_v21 = vld [vmem:[#allocation7 + $0xa0] ss:$16 sps:$4 sm:$0xff]   ;;  %v3455_v22 = vld [vmem:[#allocation7 + $0xc4] ss:$16 sps:$4 sm:$0xff]  }
  0x53   :  { %285 = vmatprep.subr.bf16.mxu0 %v3407_v5  ;;  %326 = vmatprep.subr.bf16.mxu1 %v3431_v14  ;;  %v3459_v23 = vld [vmem:[#allocation7 + $0x88] ss:$16 sps:$4 sm:$0xff]   ;;  %v3461_v24 = vld [vmem:[#allocation7 + $0xc0] ss:$16 sps:$4 sm:$0xff]   ;;  %v3464_v25 = vld [vmem:[#allocation7 + $0xac] ss:$16 sps:$4 sm:$0xff]  }
  0x54   :  { %v3466_v26 = vld [vmem:[#allocation7 + $0xe4] ss:$16 sps:$4 sm:$0xff]   ;;  %v3468_v27 = vld [vmem:[#allocation7 + $0xa8] ss:$16 sps:$4 sm:$0xff]   ;;  %v3471_v28 = vld [vmem:[#allocation7 + $0xcc] ss:$16 sps:$4 sm:$0xff]  }
  0x55   :  { %v3475_v29 = vld [vmem:[#allocation7 + $0xe0] ss:$16 sps:$4 sm:$0xff]   ;;  %v3478_v31 = vld [vmem:[#allocation7 + $0xc8] ss:$16 sps:$4 sm:$0xff]   ;;  %v3481_v32 = vld [vmem:[#allocation7 + $0xec] ss:$16 sps:$4 sm:$0xff]  }
  0x56   :  { %286 = vmatpush1.bf16.msra.mxu0 %v3414_v8  ;;  %327 = vmatpush1.bf16.msra.mxu1 %v3435_v15  ;;  %v78_v30 = vld [vmem:[#allocation9] sm:$0xff]  ;;  %v3488_v34 = vld [vmem:[#allocation7 + $0xe8] ss:$16 sps:$4 sm:$0xff]   ;;  %v86_v51 = vld [vmem:[#allocation4 + $0x10] sm:$0xff]  ;;  %s3306_s3 = smov [#allocation13]   ;;  %s3307_s22 = smov [#allocation12]  }
  0x57   :  { %287 = vmatprep.subr.bf16.mxu0 %v3418_v9  ;;  %328 = vmatprep.subr.bf16.mxu1 %v3438_v16  ;;  %v88_v33 = vpack.c.bf16 %v78_v30, %v78_v30  ;;  %v84_v35 = vld [vmem:[#allocation4] sm:$0xff]  ;;  %v87_v45 = vld [vmem:[#allocation4 + $0x18] sm:$0xff]  ;;  %v80_v60 = vld [vmem:[#allocation10] sm:$0xff]  ;;  %s2587_s21 = sshll.u32 %s3306_s3, 4  ;;  %s2574_s23 = sshll.u32 %s3307_s22, 4  ;;  %s2588_s21 = int_to_ptr.vmem [resolvable:$true] %s2587_s21  ;;  %s3818_s23 = int_to_ptr.vmem [resolvable:$true] %s2574_s23 }
  0x58   :  { %s3308_s24 = smov [#allocation15]   ;;  %s3221_s26 = scalar_lea.vmem %s2588_s21, 128 }
  0x59   :  { %s2597_s25 = sshll.u32 %s3308_s24, 4  ;;  %p3222_p4 = scmp.ne.s32.totalorder %s2588_s21, %s3221_s26  ;;  %s3820_s25 = int_to_ptr.vmem [resolvable:$true] %s2597_s25 }
  0x5a   :  { %288 = vmatpush1.bf16.msra.mxu0 %v3427_v12  ;;  %329 = vmatpush1.bf16.msra.mxu1 %v3447_v19  ;;  %p3226_p5 = scmp.lt.s32.totalorder %s2588_s21, %s2588_s21  ;;  %p3227_p6 = scmp.lt.s32.totalorder %s3221_s26, %s3221_s26 }
  0x5b   :  { %289 = vmatprep.subr.bf16.mxu0 %v3429_v13  ;;  %330 = vmatprep.subr.bf16.mxu1 %v3450_v20 }
  0x5c   :  { %p3228_p7 = por %p3227_p6, %p3226_p5 }
  0x5e   :  { %290 = vmatpush1.bf16.msra.mxu0 %v3441_v17  ;;  %331 = vmatpush1.bf16.msra.mxu1 %v3459_v23  ;;  %p3229_p8 = pnand %p3228_p7, %p3222_p4 }
  0x5f   :  { %291 = vmatprep.subr.bf16.mxu0 %v3444_v18  ;;  %332 = vmatprep.subr.bf16.mxu1 %v3464_v25 }
  0x62   :  { %292 = vmatpush1.bf16.msra.mxu0 %v3452_v21  ;;  %333 = vmatpush1.bf16.msra.mxu1 %v3468_v27 }
  0x63   :  { %293 = vmatprep.subr.bf16.mxu0 %v3455_v22  ;;  %334 = vmatprep.subr.bf16.mxu1 %v3471_v28 }
  0x66   :  { %294 = vmatpush1.bf16.msra.mxu0 %v3461_v24  ;;  %335 = vmatpush1.bf16.msra.mxu1 %v3478_v31 }
  0x67   :  { %295 = vmatprep.subr.bf16.mxu0 %v3466_v26  ;;  %336 = vmatprep.subr.bf16.mxu1 %v3481_v32 }
  0x6a   :  { %296 = vmatpush1.bf16.msra.mxu0 %v3475_v29  ;;  %337 = vmatpush1.bf16.msra.mxu1 %v3488_v34 }
  0x6b   :  { %590 = vmatprep.subr.bf16.mxu0 %v3396_v1  ;;  %631 = vmatprep.subr.bf16.mxu1 %v3409_v6 }
  0x6d   :  { %314 = vmatmul.mubr.bf16.vlgmr.msra.gmra.mrb[0].mxu0 %v88_v33  ;;  %355 = vmatmul.mubr.bf16.vlgmr.msra.gmra.mrb[0].mxu1 %v88_v33 }
  0x6e   :  { %591 = vmatpush1.bf16.msra.mxu0 %v3398_v2  ;;  %622 = vmatprep.mubr.bf16.mxu0 %v3305_v0 }
  0x6f   :  { %592 = vmatprep.subr.bf16.mxu0 %v3401_v3  ;;  %632 = vmatpush1.bf16.msra.mxu1 %v3411_v7 }
  0x70   :  { %633 = vmatprep.subr.bf16.mxu1 %v3421_v10  ;;  %663 = vmatprep.mubr.bf16.mxu1 %v3305_v0 }
  0x72   :  { %593 = vmatpush1.bf16.msra.mxu0 %v3404_v4 }
  0x73   :  { %594 = vmatprep.subr.bf16.mxu0 %v3407_v5  ;;  %634 = vmatpush1.bf16.msra.mxu1 %v3423_v11 }
  0x74   :  { %635 = vmatprep.subr.bf16.mxu1 %v3431_v14 }
  0x76   :  { %595 = vmatpush1.bf16.msra.mxu0 %v3414_v8 }
  0x77   :  { %596 = vmatprep.subr.bf16.mxu0 %v3418_v9  ;;  %636 = vmatpush1.bf16.msra.mxu1 %v3435_v15 }
  0x78   :  { %637 = vmatprep.subr.bf16.mxu1 %v3438_v16 }
  0x7a   :  { %597 = vmatpush1.bf16.msra.mxu0 %v3427_v12 }
  0x7b   :  { %598 = vmatprep.subr.bf16.mxu0 %v3429_v13  ;;  %638 = vmatpush1.bf16.msra.mxu1 %v3447_v19 }
  0x7c   :  { %639 = vmatprep.subr.bf16.mxu1 %v3450_v20 }
  0x7e   :  { %599 = vmatpush1.bf16.msra.mxu0 %v3441_v17 }
  0x7f   :  { %600 = vmatprep.subr.bf16.mxu0 %v3444_v18  ;;  %640 = vmatpush1.bf16.msra.mxu1 %v3459_v23 }
  0x80   :  { %641 = vmatprep.subr.bf16.mxu1 %v3464_v25 }
  0x82   :  { %601 = vmatpush1.bf16.msra.mxu0 %v3452_v21 }
  0x83   :  { %602 = vmatprep.subr.bf16.mxu0 %v3455_v22  ;;  %642 = vmatpush1.bf16.msra.mxu1 %v3468_v27 }
  0x84   :  { %643 = vmatprep.subr.bf16.mxu1 %v3471_v28 }
  0x86   :  { %603 = vmatpush1.bf16.msra.mxu0 %v3461_v24 }
  0x87   :  { %604 = vmatprep.subr.bf16.mxu0 %v3466_v26  ;;  %644 = vmatpush1.bf16.msra.mxu1 %v3478_v31 }
  0x88   :  { %645 = vmatprep.subr.bf16.mxu1 %v3481_v32 }
  0x8a   :  { %605 = vmatpush1.bf16.msra.mxu0 %v3475_v29 }
  0x8b   :  { %900 = vmatprep.subr.bf16.mxu0 %v3396_v1  ;;  %646 = vmatpush1.bf16.msra.mxu1 %v3488_v34 }
  0x8c   :  { %941 = vmatprep.subr.bf16.mxu1 %v3409_v6 }
 0x140   :  { %v315_v37 = vpop.f32.mrb[0].mxu0  ;;  %v356_v46 = vpop.f32.mrb[0].mxu1 }
 0x141   :  { %v363_v38 = vadd.f32 %v315_v37, %v84_v35  ;;  %v317_v39 = vpop.f32.mrb[1].mxu0  ;;  %v358_v47 = vpop.f32.mrb[1].mxu1  ;;  %v365_v53 = vadd.f32 %v356_v46, %v86_v51 }
 0x142   :  { %v364_v40 = vadd.f32 %v317_v39, %v85_v36  ;;  %v319_v41 = vpop.f32.mrb[2].mxu0  ;;  %v366_v48 = vadd.f32 %v358_v47, %v87_v45  ;;  %v360_v49 = vpop.f32.mrb[2].mxu1 }
 0x143   :  { %v2647_v42 = vmul.f32 -1.442695, %v363_v38  ;;  %v320_v43 = vpop.f32.mrb[3].mxu0  ;;  %v361_v50 = vpop.f32.mrb[3].mxu1  ;;  %v394_v41 = vld [vmem:[#allocation4 + $0x28] sm:$0xff] }
 0x144   :  { %v2648_v44 = vmul.f32 -1.442695, %v364_v40  ;;  %v2649_v52 = vmul.f32 -1.442695, %v366_v48  ;;  %v393_v40 = vld [vmem:[#allocation4 + $0x20] sm:$0xff] }
 0x145   :  { %3005 = vpow2.f32 %v2647_v42 }
 0x146   :  { %3007 = vpow2.f32 %v2648_v44 }
 0x147   :  { %3009 = vpow2.f32 %v2649_v52 }
 0x148   :  { %3011 = vtanh.f32 %v365_v53 }
 0x14f   :  { %v3006_v54 = vpop.eup %3005 }
 0x150   :  { %v3008_v55 = vpop.eup %3007  ;;  %v370_v56 = vadd.f32 1.0, %v3006_v54  ;;  %v396_v54 = vld [vmem:[#allocation4 + $0x38] sm:$0xff] }
 0x151   :  { %v376_v57 = vadd.f32 1.0, %v3008_v55  ;;  %v3010_v58 = vpop.eup %3009  ;;  %v395_v55 = vld [vmem:[#allocation4 + $0x30] sm:$0xff] }
 0x152   :  { %3013 = vrcp.f32 %v370_v56  ;;  %v3012_v59 = vpop.eup %3011  ;;  %v383_v62 = vadd.f32 1.0, %v3010_v58 }
 0x153   :  { %3015 = vrcp.f32 %v376_v57 }
 0x154   :  { %3017 = vrcp.f32 %v383_v62 }
 0x15c   :  { %v3014_v61 = vpop.eup %3013 }
 0x15d   :  { %v3016_v63 = vpop.eup %3015  ;;  %v387_v30 = vmul.f32 %v3014_v61, %v3012_v59 }
 0x15e   :  { %v386_v33 = vmul.f32 %v3016_v63, %v80_v60  ;;  %v3018_v36 = vpop.eup %3017 }
 0x160   :  { %v3528_v35 = vadd.f32 %v387_v30, %v386_v33 }
 0x162   :  { %3019 = vtanh.f32 %v3528_v35 }
 0x16c   :  { %v3020_v37 = vpop.eup %3019 }
 0x16d   :  { %v390_v38 = vmul.f32 %v3020_v37, %v3018_v36 }
 0x16f   :  { %391 = vst [vmem:[#allocation12] sm:$0xff] %v390_v38  ;;  %v397_v39 = vpack.c.bf16 %v390_v38, %v390_v38 }
 0x171   :  { %623 = vmatmul.mubr.bf16.vlgmr.msra.gmra.mrb[4].mxu0 %v397_v39  ;;  %664 = vmatmul.mubr.bf16.vlgmr.msra.gmra.mrb[4].mxu1 %v397_v39 }
 0x172   :  { %901 = vmatpush1.bf16.msra.mxu0 %v3398_v2  ;;  %942 = vmatpush1.bf16.msra.mxu1 %v3411_v7 }
 0x173   :  { %902 = vmatprep.subr.bf16.mxu0 %v3401_v3  ;;  %943 = vmatprep.subr.bf16.mxu1 %v3421_v10 }
 0x174   :  { %932 = vmatprep.mubr.bf16.mxu0 %v3305_v0  ;;  %973 = vmatprep.mubr.bf16.mxu1 %v3305_v0 }
 0x176   :  { %903 = vmatpush1.bf16.msra.mxu0 %v3404_v4  ;;  %944 = vmatpush1.bf16.msra.mxu1 %v3423_v11 }
 0x177   :  { %904 = vmatprep.subr.bf16.mxu0 %v3407_v5  ;;  %945 = vmatprep.subr.bf16.mxu1 %v3431_v14 }
 0x17a   :  { %905 = vmatpush1.bf16.msra.mxu0 %v3414_v8  ;;  %946 = vmatpush1.bf16.msra.mxu1 %v3435_v15 }
 0x17b   :  { %906 = vmatprep.subr.bf16.mxu0 %v3418_v9  ;;  %947 = vmatprep.subr.bf16.mxu1 %v3438_v16 }
 0x17e   :  { %907 = vmatpush1.bf16.msra.mxu0 %v3427_v12  ;;  %948 = vmatpush1.bf16.msra.mxu1 %v3447_v19 }
 0x17f   :  { %908 = vmatprep.subr.bf16.mxu0 %v3429_v13  ;;  %949 = vmatprep.subr.bf16.mxu1 %v3450_v20 }
 0x182   :  { %909 = vmatpush1.bf16.msra.mxu0 %v3441_v17  ;;  %950 = vmatpush1.bf16.msra.mxu1 %v3459_v23 }
 0x183   :  { %910 = vmatprep.subr.bf16.mxu0 %v3444_v18  ;;  %951 = vmatprep.subr.bf16.mxu1 %v3464_v25 }
 0x186   :  { %911 = vmatpush1.bf16.msra.mxu0 %v3452_v21  ;;  %952 = vmatpush1.bf16.msra.mxu1 %v3468_v27 }
 0x187   :  { %912 = vmatprep.subr.bf16.mxu0 %v3455_v22  ;;  %953 = vmatprep.subr.bf16.mxu1 %v3471_v28 }
 0x18a   :  { %913 = vmatpush1.bf16.msra.mxu0 %v3461_v24  ;;  %954 = vmatpush1.bf16.msra.mxu1 %v3478_v31 }
 0x18b   :  { %914 = vmatprep.subr.bf16.mxu0 %v3466_v26  ;;  %955 = vmatprep.subr.bf16.mxu1 %v3481_v32 }
 0x18e   :  { %915 = vmatpush1.bf16.msra.mxu0 %v3475_v29  ;;  %956 = vmatpush1.bf16.msra.mxu1 %v3488_v34 }
 0x18f   :  { %1210 = vmatprep.subr.bf16.mxu0 %v3396_v1  ;;  %1251 = vmatprep.subr.bf16.mxu1 %v3409_v6 }
 0x244   :  { %v624_v42 = vpop.f32.mrb[4].mxu0  ;;  %v665_v43 = vpop.f32.mrb[4].mxu1 }
 0x245   :  { %v672_v44 = vadd.f32 %v624_v42, %v393_v40  ;;  %v626_v45 = vpop.f32.mrb[5].mxu0  ;;  %v667_v46 = vpop.f32.mrb[5].mxu1  ;;  %v674_v56 = vadd.f32 %v665_v43, %v395_v55  ;;  %v3633_v55 = vld [vmem:[#allocation7 + $0x4c] ss:$16 sps:$4 sm:$0xff]  }
 0x246   :  { %v673_v47 = vadd.f32 %v626_v45, %v394_v41  ;;  %v628_v48 = vpop.f32.mrb[6].mxu0  ;;  %v669_v49 = vpop.f32.mrb[6].mxu1  ;;  %v675_v1 = vadd.f32 %v667_v46, %v396_v54  ;;  %v3625_v54 = vld [vmem:[#allocation7 + $0x28] ss:$16 sps:$4 sm:$0xff]  }
 0x247   :  { %v2682_v50 = vmul.f32 -1.442695, %v672_v44  ;;  %v629_v51 = vpop.f32.mrb[7].mxu0  ;;  %v670_v52 = vpop.f32.mrb[7].mxu1  ;;  %v3609_v48 = vld [vmem:[#allocation7 + $0xc] ss:$16 sps:$4 sm:$0xff]  }
 0x248   :  { %v2683_v53 = vmul.f32 -1.442695, %v673_v47  ;;  %v2684_v6 = vmul.f32 -1.442695, %v675_v1  ;;  %v3607_v47 = vld [vmem:[#allocation7 + $0x4] ss:$16 sps:$4 sm:$0xff]  }
 0x249   :  { %3021 = vpow2.f32 %v2682_v50  ;;  %v3611_v49 = vld [vmem:[#allocation7] ss:$16 sps:$4 sm:$0xff]   ;;  %v3613_v50 = vld [vmem:[#allocation7 + $0x8] ss:$16 sps:$4 sm:$0xff]   ;;  %v3619_v51 = vld [vmem:[#allocation7 + $0x24] ss:$16 sps:$4 sm:$0xff]  }
 0x24a   :  { %3023 = vpow2.f32 %v2683_v53  ;;  %v3621_v52 = vld [vmem:[#allocation7 + $0x2c] ss:$16 sps:$4 sm:$0xff]   ;;  %v3623_v53 = vld [vmem:[#allocation7 + $0x20] ss:$16 sps:$4 sm:$0xff]   ;;  %v3631_v1 = vld [vmem:[#allocation7 + $0x44] ss:$16 sps:$4 sm:$0xff]  }
 0x24b   :  { %3025 = vpow2.f32 %v2684_v6  ;;  %v3635_v6 = vld [vmem:[#allocation7 + $0x40] ss:$16 sps:$4 sm:$0xff]  }
 0x24c   :  { %3027 = vtanh.f32 %v674_v56  ;;  %v3637_v56 = vld [vmem:[#allocation7 + $0x48] ss:$16 sps:$4 sm:$0xff]  }
 0x253   :  { %v3022_v57 = vpop.eup %3021 }
 0x254   :  { %v3024_v58 = vpop.eup %3023  ;;  %v679_v59 = vadd.f32 1.0, %v3022_v57  ;;  %v3643_v57 = vld [vmem:[#allocation7 + $0x64] ss:$16 sps:$4 sm:$0xff]  }
 0x255   :  { %v685_v60 = vadd.f32 1.0, %v3024_v58  ;;  %v3026_v61 = vpop.eup %3025  ;;  %v3645_v58 = vld [vmem:[#allocation7 + $0x6c] ss:$16 sps:$4 sm:$0xff]  }
 0x256   :  { %3029 = vrcp.f32 %v679_v59  ;;  %v3028_v62 = vpop.eup %3027  ;;  %v692_v36 = vadd.f32 1.0, %v3026_v61  ;;  %v3647_v59 = vld [vmem:[#allocation7 + $0x60] ss:$16 sps:$4 sm:$0xff]   ;;  %v3655_v61 = vld [vmem:[#allocation7 + $0x84] ss:$16 sps:$4 sm:$0xff]  }
 0x257   :  { %3031 = vrcp.f32 %v685_v60  ;;  %v3649_v60 = vld [vmem:[#allocation7 + $0x68] ss:$16 sps:$4 sm:$0xff]  }
 0x258   :  { %3033 = vrcp.f32 %v692_v36  ;;  %v3669_v36 = vld [vmem:[#allocation7 + $0xa0] ss:$16 sps:$4 sm:$0xff]  }
 0x260   :  { %v3030_v63 = vpop.eup %3029 }
 0x261   :  { %v3032_v30 = vpop.eup %3031  ;;  %v696_v33 = vmul.f32 %v3030_v63, %v3028_v62  ;;  %v3657_v62 = vld [vmem:[#allocation7 + $0x8c] ss:$16 sps:$4 sm:$0xff]   ;;  %v3659_v63 = vld [vmem:[#allocation7 + $0x80] ss:$16 sps:$4 sm:$0xff]  }
 0x262   :  { %v695_v37 = vmul.f32 %v3032_v30, %v3528_v35  ;;  %v3034_v39 = vpop.eup %3033  ;;  %v3661_v30 = vld [vmem:[#allocation7 + $0x88] ss:$16 sps:$4 sm:$0xff]  }
 0x264   :  { %v3566_v38 = vadd.f32 %v696_v33, %v695_v37  ;;  %v3665_v33 = vld [vmem:[#allocation7 + $0xa4] ss:$16 sps:$4 sm:$0xff]   ;;  %v3671_v37 = vld [vmem:[#allocation7 + $0xa8] ss:$16 sps:$4 sm:$0xff]  }
 0x266   :  { %3035 = vtanh.f32 %v3566_v38 }
 0x270   :  { %v3036_v40 = vpop.eup %3035 }
 0x271   :  { %v699_v41 = vmul.f32 %v3036_v40, %v3034_v39  ;;  %v3676_v39 = vld [vmem:[#allocation7 + $0xc4] ss:$16 sps:$4 sm:$0xff]   ;;  %v3678_v40 = vld [vmem:[#allocation7 + $0xcc] ss:$16 sps:$4 sm:$0xff]  }
 0x273   :  { %701 = vst [vmem:[#allocation12 + $0x8] sm:$0xff] %v699_v41  ;;  %v707_v42 = vpack.c.bf16 %v699_v41, %v699_v41  ;;  %v3683_v41 = vld [vmem:[#allocation7 + $0xc0] ss:$16 sps:$4 sm:$0xff]  }
 0x275   :  { %933 = vmatmul.mubr.bf16.vlgmr.msra.gmra.mrb[8].mxu0 %v707_v42  ;;  %974 = vmatmul.mubr.bf16.vlgmr.msra.gmra.mrb[8].mxu1 %v707_v42  ;;  %v3685_v42 = vld [vmem:[#allocation7 + $0xc8] ss:$16 sps:$4 sm:$0xff]  }
 0x276   :  { %1211 = vmatpush1.bf16.msra.mxu0 %v3398_v2  ;;  %1252 = vmatpush1.bf16.msra.mxu1 %v3411_v7  ;;  %v703_v2 = vld [vmem:[#allocation4 + $0x40] sm:$0xff] }
 0x277   :  { %1212 = vmatprep.subr.bf16.mxu0 %v3401_v3  ;;  %1253 = vmatprep.subr.bf16.mxu1 %v3421_v10  ;;  %v704_v3 = vld [vmem:[#allocation4 + $0x48] sm:$0xff] }
 0x278   :  { %1242 = vmatprep.mubr.bf16.mxu0 %v3305_v0  ;;  %1283 = vmatprep.mubr.bf16.mxu1 %v3305_v0 }
 0x27a   :  { %1213 = vmatpush1.bf16.msra.mxu0 %v3404_v4  ;;  %1254 = vmatpush1.bf16.msra.mxu1 %v3423_v11 }
 0x27b   :  { %1214 = vmatprep.subr.bf16.mxu0 %v3407_v5  ;;  %1255 = vmatprep.subr.bf16.mxu1 %v3431_v14 }
 0x27e   :  { %1215 = vmatpush1.bf16.msra.mxu0 %v3414_v8  ;;  %1256 = vmatpush1.bf16.msra.mxu1 %v3435_v15 }
 0x27f   :  { %1216 = vmatprep.subr.bf16.mxu0 %v3418_v9  ;;  %1257 = vmatprep.subr.bf16.mxu1 %v3438_v16 }
 0x282   :  { %1217 = vmatpush1.bf16.msra.mxu0 %v3427_v12  ;;  %1258 = vmatpush1.bf16.msra.mxu1 %v3447_v19  ;;  %v705_v19 = vld [vmem:[#allocation4 + $0x50] sm:$0xff] }
 0x283   :  { %1218 = vmatprep.subr.bf16.mxu0 %v3429_v13  ;;  %1259 = vmatprep.subr.bf16.mxu1 %v3450_v20 }
 0x286   :  { %1219 = vmatpush1.bf16.msra.mxu0 %v3441_v17  ;;  %1260 = vmatpush1.bf16.msra.mxu1 %v3459_v23  ;;  %v706_v17 = vld [vmem:[#allocation4 + $0x58] sm:$0xff] }
 0x287   :  { %1220 = vmatprep.subr.bf16.mxu0 %v3444_v18  ;;  %1261 = vmatprep.subr.bf16.mxu1 %v3464_v25 }
 0x28a   :  { %1221 = vmatpush1.bf16.msra.mxu0 %v3452_v21  ;;  %1262 = vmatpush1.bf16.msra.mxu1 %v3468_v27 }
 0x28b   :  { %1222 = vmatprep.subr.bf16.mxu0 %v3455_v22  ;;  %1263 = vmatprep.subr.bf16.mxu1 %v3471_v28 }
 0x28e   :  { %1223 = vmatpush1.bf16.msra.mxu0 %v3461_v24  ;;  %1264 = vmatpush1.bf16.msra.mxu1 %v3478_v31 }
 0x28f   :  { %1224 = vmatprep.subr.bf16.mxu0 %v3466_v26  ;;  %1265 = vmatprep.subr.bf16.mxu1 %v3481_v32 }
 0x292   :  { %1225 = vmatpush1.bf16.msra.mxu0 %v3475_v29  ;;  %1266 = vmatpush1.bf16.msra.mxu1 %v3488_v34 }
 0x293   :  { %1520 = vmatprep.subr.bf16.mxu0 %v3607_v47  ;;  %1561 = vmatprep.subr.bf16.mxu1 %v3609_v48 }
 0x348   :  { %v934_v4 = vpop.f32.mrb[8].mxu0  ;;  %v975_v5 = vpop.f32.mrb[8].mxu1 }
 0x349   :  { %v982_v7 = vadd.f32 %v934_v4, %v703_v2  ;;  %v936_v8 = vpop.f32.mrb[9].mxu0  ;;  %v977_v9 = vpop.f32.mrb[9].mxu1  ;;  %v984_v21 = vadd.f32 %v975_v5, %v705_v19  ;;  %v3689_v2 = vld [vmem:[#allocation7 + $0xe4] ss:$16 sps:$4 sm:$0xff]   ;;  %v3695_v4 = vld [vmem:[#allocation7 + $0xe0] ss:$16 sps:$4 sm:$0xff]  }
 0x34a   :  { %v983_v10 = vadd.f32 %v936_v8, %v704_v3  ;;  %v938_v11 = vpop.f32.mrb[10].mxu0  ;;  %v979_v12 = vpop.f32.mrb[10].mxu1  ;;  %v985_v18 = vadd.f32 %v977_v9, %v706_v17  ;;  %v3691_v3 = vld [vmem:[#allocation7 + $0xec] ss:$16 sps:$4 sm:$0xff]   ;;  %v3697_v5 = vld [vmem:[#allocation7 + $0xe8] ss:$16 sps:$4 sm:$0xff]  }
 0x34b   :  { %v2717_v13 = vmul.f32 -1.442695, %v982_v7  ;;  %v939_v14 = vpop.f32.mrb[11].mxu0  ;;  %v980_v15 = vpop.f32.mrb[11].mxu1  ;;  %v1013_v7 = vld [vmem:[#allocation4 + $0x60] sm:$0xff]  ;;  %v1014_v8 = vld [vmem:[#allocation4 + $0x68] sm:$0xff] }
 0x34c   :  { %v2718_v16 = vmul.f32 -1.442695, %v983_v10  ;;  %v2719_v20 = vmul.f32 -1.442695, %v985_v18 }
 0x34d   :  { %3037 = vpow2.f32 %v2717_v13 }
 0x34e   :  { %3039 = vpow2.f32 %v2718_v16 }
 0x34f   :  { %3041 = vpow2.f32 %v2719_v20 }
 0x350   :  { %3043 = vtanh.f32 %v984_v21  ;;  %v1016_v21 = vld [vmem:[#allocation4 + $0x78] sm:$0xff] }
 0x357   :  { %v3038_v22 = vpop.eup %3037 }
 0x358   :  { %v3040_v23 = vpop.eup %3039  ;;  %v989_v24 = vadd.f32 1.0, %v3038_v22 }
 0x359   :  { %v995_v25 = vadd.f32 1.0, %v3040_v23  ;;  %v3042_v26 = vpop.eup %3041  ;;  %v1015_v23 = vld [vmem:[#allocation4 + $0x70] sm:$0xff] }
 0x35a   :  { %3045 = vrcp.f32 %v989_v24  ;;  %v3044_v27 = vpop.eup %3043  ;;  %v1002_v32 = vadd.f32 1.0, %v3042_v26 }
 0x35b   :  { %3047 = vrcp.f32 %v995_v25 }
 0x35c   :  { %3049 = vrcp.f32 %v1002_v32 }
 0x364   :  { %v3046_v28 = vpop.eup %3045 }
 0x365   :  { %v3048_v29 = vpop.eup %3047  ;;  %v1006_v31 = vmul.f32 %v3046_v28, %v3044_v27 }
 0x366   :  { %v1005_v34 = vmul.f32 %v3048_v29, %v3566_v38  ;;  %v3050_v43 = vpop.eup %3049  ;;  %v3673_v38 = vld [vmem:[#allocation7 + $0xac] ss:$16 sps:$4 sm:$0xff]  }
 0x368   :  { %v3602_v35 = vadd.f32 %v1006_v31, %v1005_v34 }
 0x36a   :  { %3051 = vtanh.f32 %v3602_v35 }
 0x374   :  { %v3052_v44 = vpop.eup %3051 }
 0x375   :  { %v1009_v45 = vmul.f32 %v3052_v44, %v3050_v43 }
 0x377   :  { %1011 = vst [vmem:[#allocation12 + $0x10] sm:$0xff] %v1009_v45  ;;  %v1017_v46 = vpack.c.bf16 %v1009_v45, %v1009_v45 }
 0x379   :  { %1243 = vmatmul.mubr.bf16.vlgmr.msra.gmra.mrb[12].mxu0 %v1017_v46  ;;  %1284 = vmatmul.mubr.bf16.vlgmr.msra.gmra.mrb[12].mxu1 %v1017_v46 }
 0x37a   :  { %1552 = vmatprep.mubr.bf16.mxu0 %v3305_v0  ;;  %1593 = vmatprep.mubr.bf16.mxu1 %v3305_v0 }
 0x37b   :  { %1521 = vmatpush1.bf16.msra.mxu0 %v3611_v49  ;;  %1562 = vmatpush1.bf16.msra.mxu1 %v3613_v50 }
 0x37c   :  { %1522 = vmatprep.subr.bf16.mxu0 %v3619_v51  ;;  %1563 = vmatprep.subr.bf16.mxu1 %v3621_v52 }
 0x37f   :  { %1523 = vmatpush1.bf16.msra.mxu0 %v3623_v53  ;;  %1564 = vmatpush1.bf16.msra.mxu1 %v3625_v54 }
 0x380   :  { %1524 = vmatprep.subr.bf16.mxu0 %v3631_v1  ;;  %1565 = vmatprep.subr.bf16.mxu1 %v3633_v55 }
 0x383   :  { %1525 = vmatpush1.bf16.msra.mxu0 %v3635_v6  ;;  %1566 = vmatpush1.bf16.msra.mxu1 %v3637_v56 }
 0x384   :  { %1526 = vmatprep.subr.bf16.mxu0 %v3643_v57  ;;  %1567 = vmatprep.subr.bf16.mxu1 %v3645_v58 }
 0x387   :  { %1527 = vmatpush1.bf16.msra.mxu0 %v3647_v59  ;;  %1568 = vmatpush1.bf16.msra.mxu1 %v3649_v60 }
 0x388   :  { %1528 = vmatprep.subr.bf16.mxu0 %v3655_v61  ;;  %1569 = vmatprep.subr.bf16.mxu1 %v3657_v62 }
 0x38b   :  { %1529 = vmatpush1.bf16.msra.mxu0 %v3659_v63  ;;  %1570 = vmatpush1.bf16.msra.mxu1 %v3661_v30 }
 0x38c   :  { %1530 = vmatprep.subr.bf16.mxu0 %v3665_v33  ;;  %1571 = vmatprep.subr.bf16.mxu1 %v3673_v38 }
 0x38f   :  { %1531 = vmatpush1.bf16.msra.mxu0 %v3669_v36  ;;  %1572 = vmatpush1.bf16.msra.mxu1 %v3671_v37 }
 0x390   :  { %1532 = vmatprep.subr.bf16.mxu0 %v3676_v39  ;;  %1573 = vmatprep.subr.bf16.mxu1 %v3678_v40 }
 0x393   :  { %1533 = vmatpush1.bf16.msra.mxu0 %v3683_v41  ;;  %1574 = vmatpush1.bf16.msra.mxu1 %v3685_v42 }
 0x394   :  { %1534 = vmatprep.subr.bf16.mxu0 %v3689_v2  ;;  %1575 = vmatprep.subr.bf16.mxu1 %v3691_v3 }
 0x397   :  { %1535 = vmatpush1.bf16.msra.mxu0 %v3695_v4  ;;  %1576 = vmatpush1.bf16.msra.mxu1 %v3697_v5 }
 0x398   :  { %1830 = vmatprep.subr.bf16.mxu0 %v3607_v47  ;;  %1871 = vmatprep.subr.bf16.mxu1 %v3609_v48 }
 0x44c   :  { %v1244_v9 = vpop.f32.mrb[12].mxu0  ;;  %v1285_v10 = vpop.f32.mrb[12].mxu1 }
 0x44d   :  { %v1292_v11 = vadd.f32 %v1244_v9, %v1013_v7  ;;  %v1246_v12 = vpop.f32.mrb[13].mxu0  ;;  %v1287_v13 = vpop.f32.mrb[13].mxu1  ;;  %v1294_v25 = vadd.f32 %v1285_v10, %v1015_v23 }
 0x44e   :  { %v1293_v14 = vadd.f32 %v1246_v12, %v1014_v8  ;;  %v1248_v15 = vpop.f32.mrb[14].mxu0  ;;  %v1289_v16 = vpop.f32.mrb[14].mxu1  ;;  %v1295_v22 = vadd.f32 %v1287_v13, %v1016_v21  ;;  %v1324_v12 = vld [vmem:[#allocation4 + $0x88] sm:$0xff] }
 0x44f   :  { %v2752_v17 = vmul.f32 -1.442695, %v1292_v11  ;;  %v1249_v18 = vpop.f32.mrb[15].mxu0  ;;  %v1290_v19 = vpop.f32.mrb[15].mxu1 }
 0x450   :  { %v2753_v20 = vmul.f32 -1.442695, %v1293_v14  ;;  %v2754_v24 = vmul.f32 -1.442695, %v1295_v22 }
 0x451   :  { %3053 = vpow2.f32 %v2752_v17 }
 0x452   :  { %3055 = vpow2.f32 %v2753_v20 }
 0x453   :  { %3057 = vpow2.f32 %v2754_v24 }
 0x454   :  { %3059 = vtanh.f32 %v1294_v25  ;;  %v1326_v25 = vld [vmem:[#allocation4 + $0x98] sm:$0xff] }
 0x45b   :  { %v3054_v26 = vpop.eup %3053 }
 0x45c   :  { %v3056_v27 = vpop.eup %3055  ;;  %v1299_v28 = vadd.f32 1.0, %v3054_v26 }
 0x45d   :  { %v1305_v29 = vadd.f32 1.0, %v3056_v27  ;;  %v3058_v31 = vpop.eup %3057  ;;  %v1325_v27 = vld [vmem:[#allocation4 + $0x90] sm:$0xff] }
 0x45e   :  { %3061 = vrcp.f32 %v1299_v28  ;;  %v3060_v32 = vpop.eup %3059  ;;  %v1312_v45 = vadd.f32 1.0, %v3058_v31 }
 0x45f   :  { %3063 = vrcp.f32 %v1305_v29 }
 0x460   :  { %3065 = vrcp.f32 %v1312_v45 }
 0x468   :  { %v3062_v34 = vpop.eup %3061 }
 0x469   :  { %v3064_v43 = vpop.eup %3063  ;;  %v1316_v44 = vmul.f32 %v3062_v34, %v3060_v32 }
 0x46a   :  { %v1315_v46 = vmul.f32 %v3064_v43, %v3602_v35  ;;  %v3066_v8 = vpop.eup %3065  ;;  %v1323_v35 = vld [vmem:[#allocation4 + $0x80] sm:$0xff] }
 0x46c   :  { %v3706_v7 = vadd.f32 %v1316_v44, %v1315_v46 }
 0x46e   :  { %3067 = vtanh.f32 %v3706_v7 }
 0x478   :  { %v3068_v9 = vpop.eup %3067 }
 0x479   :  { %v1319_v10 = vmul.f32 %v3068_v9, %v3066_v8 }
 0x47b   :  { %1321 = vst [vmem:[#allocation12 + $0x18] sm:$0xff] %v1319_v10  ;;  %v1327_v11 = vpack.c.bf16 %v1319_v10, %v1319_v10 }
 0x47d   :  { %1553 = vmatmul.mubr.bf16.vlgmr.msra.gmra.mrb[16].mxu0 %v1327_v11  ;;  %1594 = vmatmul.mubr.bf16.vlgmr.msra.gmra.mrb[16].mxu1 %v1327_v11 }
 0x47e   :  { %1831 = vmatpush1.bf16.msra.mxu0 %v3611_v49  ;;  %1872 = vmatpush1.bf16.msra.mxu1 %v3613_v50 }
 0x47f   :  { %1832 = vmatprep.subr.bf16.mxu0 %v3619_v51  ;;  %1873 = vmatprep.subr.bf16.mxu1 %v3621_v52 }
 0x480   :  { %1862 = vmatprep.mubr.bf16.mxu0 %v3305_v0  ;;  %1903 = vmatprep.mubr.bf16.mxu1 %v3305_v0 }
 0x482   :  { %1833 = vmatpush1.bf16.msra.mxu0 %v3623_v53  ;;  %1874 = vmatpush1.bf16.msra.mxu1 %v3625_v54 }
 0x483   :  { %1834 = vmatprep.subr.bf16.mxu0 %v3631_v1  ;;  %1875 = vmatprep.subr.bf16.mxu1 %v3633_v55 }
 0x486   :  { %1835 = vmatpush1.bf16.msra.mxu0 %v3635_v6  ;;  %1876 = vmatpush1.bf16.msra.mxu1 %v3637_v56 }
 0x487   :  { %1836 = vmatprep.subr.bf16.mxu0 %v3643_v57  ;;  %1877 = vmatprep.subr.bf16.mxu1 %v3645_v58 }
 0x48a   :  { %1837 = vmatpush1.bf16.msra.mxu0 %v3647_v59  ;;  %1878 = vmatpush1.bf16.msra.mxu1 %v3649_v60 }
 0x48b   :  { %1838 = vmatprep.subr.bf16.mxu0 %v3655_v61  ;;  %1879 = vmatprep.subr.bf16.mxu1 %v3657_v62 }
 0x48e   :  { %1839 = vmatpush1.bf16.msra.mxu0 %v3659_v63  ;;  %1880 = vmatpush1.bf16.msra.mxu1 %v3661_v30 }
 0x48f   :  { %1840 = vmatprep.subr.bf16.mxu0 %v3665_v33  ;;  %1881 = vmatprep.subr.bf16.mxu1 %v3673_v38 }
 0x492   :  { %1841 = vmatpush1.bf16.msra.mxu0 %v3669_v36  ;;  %1882 = vmatpush1.bf16.msra.mxu1 %v3671_v37 }
 0x493   :  { %1842 = vmatprep.subr.bf16.mxu0 %v3676_v39  ;;  %1883 = vmatprep.subr.bf16.mxu1 %v3678_v40 }
 0x496   :  { %1843 = vmatpush1.bf16.msra.mxu0 %v3683_v41  ;;  %1884 = vmatpush1.bf16.msra.mxu1 %v3685_v42 }
 0x497   :  { %1844 = vmatprep.subr.bf16.mxu0 %v3689_v2  ;;  %1885 = vmatprep.subr.bf16.mxu1 %v3691_v3 }
 0x49a   :  { %1845 = vmatpush1.bf16.msra.mxu0 %v3695_v4  ;;  %1886 = vmatpush1.bf16.msra.mxu1 %v3697_v5 }
 0x49b   :  { %2140 = vmatprep.subr.bf16.mxu0 %v3607_v47  ;;  %2181 = vmatprep.subr.bf16.mxu1 %v3609_v48 }
 0x550   :  { %v1554_v13 = vpop.f32.mrb[16].mxu0  ;;  %v1595_v14 = vpop.f32.mrb[16].mxu1 }
 0x551   :  { %v1602_v15 = vadd.f32 %v1554_v13, %v1323_v35  ;;  %v1556_v16 = vpop.f32.mrb[17].mxu0  ;;  %v1597_v17 = vpop.f32.mrb[17].mxu1  ;;  %v1604_v29 = vadd.f32 %v1595_v14, %v1325_v27 }
 0x552   :  { %v1603_v18 = vadd.f32 %v1556_v16, %v1324_v12  ;;  %v1558_v19 = vpop.f32.mrb[18].mxu0  ;;  %v1599_v20 = vpop.f32.mrb[18].mxu1  ;;  %v1605_v26 = vadd.f32 %v1597_v17, %v1326_v25  ;;  %v1634_v16 = vld [vmem:[#allocation4 + $0xa8] sm:$0xff] }
 0x553   :  { %v2787_v21 = vmul.f32 -1.442695, %v1602_v15  ;;  %v1559_v22 = vpop.f32.mrb[19].mxu0  ;;  %v1600_v23 = vpop.f32.mrb[19].mxu1 }
 0x554   :  { %v2788_v24 = vmul.f32 -1.442695, %v1603_v18  ;;  %v2789_v28 = vmul.f32 -1.442695, %v1605_v26 }
 0x555   :  { %3069 = vpow2.f32 %v2787_v21 }
 0x556   :  { %3071 = vpow2.f32 %v2788_v24 }
 0x557   :  { %3073 = vpow2.f32 %v2789_v28 }
 0x558   :  { %3075 = vtanh.f32 %v1604_v29  ;;  %v1636_v29 = vld [vmem:[#allocation4 + $0xb8] sm:$0xff] }
 0x55f   :  { %v3070_v31 = vpop.eup %3069 }
 0x560   :  { %v3072_v32 = vpop.eup %3071  ;;  %v1609_v34 = vadd.f32 1.0, %v3070_v31  ;;  %v1635_v31 = vld [vmem:[#allocation4 + $0xb0] sm:$0xff] }
 0x561   :  { %v1615_v43 = vadd.f32 1.0, %v3072_v32  ;;  %v3074_v44 = vpop.eup %3073 }
 0x562   :  { %3077 = vrcp.f32 %v1609_v34  ;;  %v3076_v45 = vpop.eup %3075  ;;  %v1622_v10 = vadd.f32 1.0, %v3074_v44 }
 0x563   :  { %3079 = vrcp.f32 %v1615_v43 }
 0x564   :  { %3081 = vrcp.f32 %v1622_v10 }
 0x56c   :  { %v3078_v46 = vpop.eup %3077 }
 0x56d   :  { %v3080_v8 = vpop.eup %3079  ;;  %v1626_v9 = vmul.f32 %v3078_v46, %v3076_v45 }
 0x56e   :  { %v1625_v11 = vmul.f32 %v3080_v8, %v3706_v7  ;;  %v3082_v12 = vpop.eup %3081  ;;  %v1633_v7 = vld [vmem:[#allocation4 + $0xa0] sm:$0xff] }
 0x570   :  { %v3744_v35 = vadd.f32 %v1626_v9, %v1625_v11 }
 0x572   :  { %3083 = vtanh.f32 %v3744_v35 }
 0x57c   :  { %v3084_v13 = vpop.eup %3083 }
 0x57d   :  { %v1629_v14 = vmul.f32 %v3084_v13, %v3082_v12 }
 0x57f   :  { %1631 = vst [vmem:[#allocation12 + $0x20] sm:$0xff] %v1629_v14  ;;  %v1637_v15 = vpack.c.bf16 %v1629_v14, %v1629_v14 }
 0x581   :  { %1863 = vmatmul.mubr.bf16.vlgmr.msra.gmra.mrb[20].mxu0 %v1637_v15  ;;  %1904 = vmatmul.mubr.bf16.vlgmr.msra.gmra.mrb[20].mxu1 %v1637_v15 }
 0x582   :  { %2141 = vmatpush1.bf16.msra.mxu0 %v3611_v49  ;;  %2182 = vmatpush1.bf16.msra.mxu1 %v3613_v50 }
 0x583   :  { %2142 = vmatprep.subr.bf16.mxu0 %v3619_v51  ;;  %2183 = vmatprep.subr.bf16.mxu1 %v3621_v52 }
 0x584   :  { %2172 = vmatprep.mubr.bf16.mxu0 %v3305_v0  ;;  %2213 = vmatprep.mubr.bf16.mxu1 %v3305_v0 }
 0x586   :  { %2143 = vmatpush1.bf16.msra.mxu0 %v3623_v53  ;;  %2184 = vmatpush1.bf16.msra.mxu1 %v3625_v54 }
 0x587   :  { %2144 = vmatprep.subr.bf16.mxu0 %v3631_v1  ;;  %2185 = vmatprep.subr.bf16.mxu1 %v3633_v55 }
 0x58a   :  { %2145 = vmatpush1.bf16.msra.mxu0 %v3635_v6  ;;  %2186 = vmatpush1.bf16.msra.mxu1 %v3637_v56 }
 0x58b   :  { %2146 = vmatprep.subr.bf16.mxu0 %v3643_v57  ;;  %2187 = vmatprep.subr.bf16.mxu1 %v3645_v58 }
 0x58e   :  { %2147 = vmatpush1.bf16.msra.mxu0 %v3647_v59  ;;  %2188 = vmatpush1.bf16.msra.mxu1 %v3649_v60 }
 0x58f   :  { %2148 = vmatprep.subr.bf16.mxu0 %v3655_v61  ;;  %2189 = vmatprep.subr.bf16.mxu1 %v3657_v62 }
 0x592   :  { %2149 = vmatpush1.bf16.msra.mxu0 %v3659_v63  ;;  %2190 = vmatpush1.bf16.msra.mxu1 %v3661_v30 }
 0x593   :  { %2150 = vmatprep.subr.bf16.mxu0 %v3665_v33  ;;  %2191 = vmatprep.subr.bf16.mxu1 %v3673_v38 }
 0x596   :  { %2151 = vmatpush1.bf16.msra.mxu0 %v3669_v36  ;;  %2192 = vmatpush1.bf16.msra.mxu1 %v3671_v37 }
 0x597   :  { %2152 = vmatprep.subr.bf16.mxu0 %v3676_v39  ;;  %2193 = vmatprep.subr.bf16.mxu1 %v3678_v40 }
 0x59a   :  { %2153 = vmatpush1.bf16.msra.mxu0 %v3683_v41  ;;  %2194 = vmatpush1.bf16.msra.mxu1 %v3685_v42 }
 0x59b   :  { %2154 = vmatprep.subr.bf16.mxu0 %v3689_v2  ;;  %2195 = vmatprep.subr.bf16.mxu1 %v3691_v3 }
 0x59e   :  { %2155 = vmatpush1.bf16.msra.mxu0 %v3695_v4  ;;  %2196 = vmatpush1.bf16.msra.mxu1 %v3697_v5 }
 0x59f   :  { %2450 = vmatprep.subr.bf16.mxu0 %v3607_v47  ;;  %2491 = vmatprep.subr.bf16.mxu1 %v3609_v48 }
 0x654   :  { %v1864_v17 = vpop.f32.mrb[20].mxu0  ;;  %v1905_v18 = vpop.f32.mrb[20].mxu1 }
 0x655   :  { %v1912_v19 = vadd.f32 %v1864_v17, %v1633_v7  ;;  %v1866_v20 = vpop.f32.mrb[21].mxu0  ;;  %v1907_v21 = vpop.f32.mrb[21].mxu1  ;;  %v1914_v32 = vadd.f32 %v1905_v18, %v1635_v31 }
 0x656   :  { %v1913_v22 = vadd.f32 %v1866_v20, %v1634_v16  ;;  %v1868_v23 = vpop.f32.mrb[22].mxu0  ;;  %v1909_v24 = vpop.f32.mrb[22].mxu1  ;;  %v1915_v47 = vadd.f32 %v1907_v21, %v1636_v29  ;;  %v2253_v21 = vld [vmem:[#allocation4 + $0xe0] sm:$0xff] }
 0x657   :  { %v2822_v25 = vmul.f32 -1.442695, %v1912_v19  ;;  %v1869_v26 = vpop.f32.mrb[23].mxu0  ;;  %v1910_v27 = vpop.f32.mrb[23].mxu1 }
 0x658   :  { %v2823_v28 = vmul.f32 -1.442695, %v1913_v22  ;;  %v2824_v48 = vmul.f32 -1.442695, %v1915_v47  ;;  %v2254_v22 = vld [vmem:[#allocation4 + $0xe8] sm:$0xff] }
 0x659   :  { %3085 = vpow2.f32 %v2822_v25 }
 0x65a   :  { %3087 = vpow2.f32 %v2823_v28 }
 0x65b   :  { %3089 = vpow2.f32 %v2824_v48 }
 0x65c   :  { %3091 = vtanh.f32 %v1914_v32 }
 0x663   :  { %v3086_v34 = vpop.eup %3085 }
 0x664   :  { %v3088_v43 = vpop.eup %3087  ;;  %v1919_v44 = vadd.f32 1.0, %v3086_v34 }
 0x665   :  { %v1925_v45 = vadd.f32 1.0, %v3088_v43  ;;  %v3090_v46 = vpop.eup %3089  ;;  %v2256_v43 = vld [vmem:[#allocation4 + $0xf8] sm:$0xff] }
 0x666   :  { %3093 = vrcp.f32 %v1919_v44  ;;  %v3092_v8 = vpop.eup %3091  ;;  %v1932_v12 = vadd.f32 1.0, %v3090_v46 }
 0x667   :  { %3095 = vrcp.f32 %v1925_v45  ;;  %v2255_v45 = vld [vmem:[#allocation4 + $0xf0] sm:$0xff] }
 0x668   :  { %3097 = vrcp.f32 %v1932_v12 }
 0x670   :  { %v3094_v9 = vpop.eup %3093 }
 0x671   :  { %v3096_v10 = vpop.eup %3095  ;;  %v1936_v11 = vmul.f32 %v3094_v9, %v3092_v8 }
 0x672   :  { %v1935_v13 = vmul.f32 %v3096_v10, %v3744_v35  ;;  %v3098_v15 = vpop.eup %3097 }
 0x674   :  { %v3782_v14 = vadd.f32 %v1936_v11, %v1935_v13 }
 0x676   :  { %3099 = vtanh.f32 %v3782_v14 }
 0x680   :  { %v3100_v7 = vpop.eup %3099 }
 0x681   :  { %v1939_v16 = vmul.f32 %v3100_v7, %v3098_v15 }
 0x683   :  { %1941 = vst [vmem:[#allocation12 + $0x28] sm:$0xff] %v1939_v16  ;;  %v1947_v17 = vpack.c.bf16 %v1939_v16, %v1939_v16 }
 0x685   :  { %2173 = vmatmul.mubr.bf16.vlgmr.msra.gmra.mrb[24].mxu0 %v1947_v17  ;;  %2214 = vmatmul.mubr.bf16.vlgmr.msra.gmra.mrb[24].mxu1 %v1947_v17 }
 0x686   :  { %2451 = vmatpush1.bf16.msra.mxu0 %v3611_v49  ;;  %2492 = vmatpush1.bf16.msra.mxu1 %v3613_v50  ;;  %v1944_v49 = vld [vmem:[#allocation4 + $0xc8] sm:$0xff] }
 0x687   :  { %2452 = vmatprep.subr.bf16.mxu0 %v3619_v51  ;;  %2493 = vmatprep.subr.bf16.mxu1 %v3621_v52 }
 0x688   :  { %2482 = vmatprep.mubr.bf16.mxu0 %v3305_v0  ;;  %2523 = vmatprep.mubr.bf16.mxu1 %v3305_v0  ;;  %v1943_v0 = vld [vmem:[#allocation4 + $0xc0] sm:$0xff] }
 0x68a   :  { %2453 = vmatpush1.bf16.msra.mxu0 %v3623_v53  ;;  %2494 = vmatpush1.bf16.msra.mxu1 %v3625_v54 }
 0x68b   :  { %2454 = vmatprep.subr.bf16.mxu0 %v3631_v1  ;;  %2495 = vmatprep.subr.bf16.mxu1 %v3633_v55 }
 0x68e   :  { %2455 = vmatpush1.bf16.msra.mxu0 %v3635_v6  ;;  %2496 = vmatpush1.bf16.msra.mxu1 %v3637_v56 }
 0x68f   :  { %2456 = vmatprep.subr.bf16.mxu0 %v3643_v57  ;;  %2497 = vmatprep.subr.bf16.mxu1 %v3645_v58 }
 0x692   :  { %2457 = vmatpush1.bf16.msra.mxu0 %v3647_v59  ;;  %2498 = vmatpush1.bf16.msra.mxu1 %v3649_v60  ;;  %v1946_v60 = vld [vmem:[#allocation4 + $0xd8] sm:$0xff] }
 0x693   :  { %2458 = vmatprep.subr.bf16.mxu0 %v3655_v61  ;;  %2499 = vmatprep.subr.bf16.mxu1 %v3657_v62  ;;  %v1945_v62 = vld [vmem:[#allocation4 + $0xd0] sm:$0xff] }
 0x696   :  { %2459 = vmatpush1.bf16.msra.mxu0 %v3659_v63  ;;  %2500 = vmatpush1.bf16.msra.mxu1 %v3661_v30 }
 0x697   :  { %2460 = vmatprep.subr.bf16.mxu0 %v3665_v33  ;;  %2501 = vmatprep.subr.bf16.mxu1 %v3673_v38 }
 0x69a   :  { %2461 = vmatpush1.bf16.msra.mxu0 %v3669_v36  ;;  %2502 = vmatpush1.bf16.msra.mxu1 %v3671_v37 }
 0x69b   :  { %2462 = vmatprep.subr.bf16.mxu0 %v3676_v39  ;;  %2503 = vmatprep.subr.bf16.mxu1 %v3678_v40 }
 0x69e   :  { %2463 = vmatpush1.bf16.msra.mxu0 %v3683_v41  ;;  %2504 = vmatpush1.bf16.msra.mxu1 %v3685_v42 }
 0x69f   :  { %2464 = vmatprep.subr.bf16.mxu0 %v3689_v2  ;;  %2505 = vmatprep.subr.bf16.mxu1 %v3691_v3 }
 0x6a2   :  { %2465 = vmatpush1.bf16.msra.mxu0 %v3695_v4  ;;  %2506 = vmatpush1.bf16.msra.mxu1 %v3697_v5 }
 0x758   :  { %v2174_v50 = vpop.f32.mrb[24].mxu0  ;;  %v2215_v51 = vpop.f32.mrb[24].mxu1 }
 0x759   :  { %v2222_v52 = vadd.f32 %v2174_v50, %v1943_v0  ;;  %v2176_v53 = vpop.f32.mrb[25].mxu0  ;;  %v2217_v54 = vpop.f32.mrb[25].mxu1  ;;  %v2224_v30 = vadd.f32 %v2215_v51, %v1945_v62 }
 0x75a   :  { %v2223_v1 = vadd.f32 %v2176_v53, %v1944_v49  ;;  %v2178_v55 = vpop.f32.mrb[26].mxu0  ;;  %v2219_v6 = vpop.f32.mrb[26].mxu1  ;;  %v2225_v61 = vadd.f32 %v2217_v54, %v1946_v60 }
 0x75b   :  { %v2857_v56 = vmul.f32 -1.442695, %v2222_v52  ;;  %v2179_v57 = vpop.f32.mrb[27].mxu0  ;;  %v2220_v58 = vpop.f32.mrb[27].mxu1 }
 0x75c   :  { %v2858_v59 = vmul.f32 -1.442695, %v2223_v1  ;;  %v2859_v63 = vmul.f32 -1.442695, %v2225_v61 }
 0x75d   :  { %3101 = vpow2.f32 %v2857_v56 }
 0x75e   :  { %3103 = vpow2.f32 %v2858_v59 }
 0x75f   :  { %3105 = vpow2.f32 %v2859_v63 }
 0x760   :  { %3107 = vtanh.f32 %v2224_v30 }
 0x767   :  { %v3102_v33 = vpop.eup %3101 }
 0x768   :  { %v3104_v36 = vpop.eup %3103  ;;  %v2229_v37 = vadd.f32 1.0, %v3102_v33 }
 0x769   :  { %v2235_v38 = vadd.f32 1.0, %v3104_v36  ;;  %v3106_v39 = vpop.eup %3105 }
 0x76a   :  { %3109 = vrcp.f32 %v2229_v37  ;;  %v3108_v40 = vpop.eup %3107  ;;  %v2242_v3 = vadd.f32 1.0, %v3106_v39 }
 0x76b   :  { %3111 = vrcp.f32 %v2235_v38 }
 0x76c   :  { %3113 = vrcp.f32 %v2242_v3 }
 0x774   :  { %v3110_v41 = vpop.eup %3109 }
 0x775   :  { %v3112_v42 = vpop.eup %3111  ;;  %v2246_v2 = vmul.f32 %v3110_v41, %v3108_v40 }
 0x776   :  { %v2245_v4 = vmul.f32 %v3112_v42, %v3782_v14  ;;  %v3114_v35 = vpop.eup %3113 }
 0x778   :  { %v2247_v5 = vadd.f32 %v2246_v2, %v2245_v4 }
 0x77a   :  { %3115 = vtanh.f32 %v2247_v5 }
 0x784   :  { %v3116_v18 = vpop.eup %3115 }
 0x785   :  { %v2249_v19 = vmul.f32 %v3116_v18, %v3114_v35 }
 0x787   :  { %2251 = vst [vmem:[#allocation12 + $0x30] sm:$0xff] %v2249_v19  ;;  %v2257_v20 = vpack.c.bf16 %v2249_v19, %v2249_v19 }
 0x789   :  { %2483 = vmatmul.mubr.bf16.vlgmr.msra.gmra.mrb[28].mxu0 %v2257_v20  ;;  %2524 = vmatmul.mubr.bf16.vlgmr.msra.gmra.mrb[28].mxu1 %v2257_v20 }
 0x85c   :  { %v2484_v23 = vpop.f32.mrb[28].mxu0  ;;  %v2525_v24 = vpop.f32.mrb[28].mxu1 }
 0x85d   :  { %v2532_v25 = vadd.f32 %v2484_v23, %v2253_v21  ;;  %v2486_v26 = vpop.f32.mrb[29].mxu0  ;;  %v2527_v27 = vpop.f32.mrb[29].mxu1  ;;  %v2534_v8 = vadd.f32 %v2525_v24, %v2255_v45 }
 0x85e   :  { %v2533_v28 = vadd.f32 %v2486_v26, %v2254_v22  ;;  %v2488_v29 = vpop.f32.mrb[30].mxu0  ;;  %v2529_v47 = vpop.f32.mrb[30].mxu1  ;;  %v2535_v44 = vadd.f32 %v2527_v27, %v2256_v43 }
 0x85f   :  { %v2892_v31 = vmul.f32 -1.442695, %v2532_v25  ;;  %v2489_v48 = vpop.f32.mrb[31].mxu0  ;;  %v2530_v32 = vpop.f32.mrb[31].mxu1 }
 0x860   :  { %v2893_v34 = vmul.f32 -1.442695, %v2533_v28  ;;  %v2894_v46 = vmul.f32 -1.442695, %v2535_v44 }
 0x861   :  { %3117 = vpow2.f32 %v2892_v31 }
 0x862   :  { %3119 = vpow2.f32 %v2893_v34 }
 0x863   :  { %3121 = vpow2.f32 %v2894_v46 }
 0x864   :  { %3123 = vtanh.f32 %v2534_v8 }
 0x86b   :  { %v3118_v9 = vpop.eup %3117 }
 0x86c   :  { %v3120_v10 = vpop.eup %3119  ;;  %v2539_v11 = vadd.f32 1.0, %v3118_v9 }
 0x86d   :  { %v2545_v12 = vadd.f32 1.0, %v3120_v10  ;;  %v3122_v13 = vpop.eup %3121 }
 0x86e   :  { %3125 = vrcp.f32 %v2539_v11  ;;  %v3124_v14 = vpop.eup %3123  ;;  %v2552_v17 = vadd.f32 1.0, %v3122_v13 }
 0x86f   :  { %3127 = vrcp.f32 %v2545_v12 }
 0x870   :  { %3129 = vrcp.f32 %v2552_v17 }
 0x878   :  { %v3126_v15 = vpop.eup %3125 }
 0x879   :  { %v3128_v7 = vpop.eup %3127  ;;  %v2556_v16 = vmul.f32 %v3126_v15, %v3124_v14 }
 0x87a   :  { %v2555_v0 = vmul.f32 %v3128_v7, %v2247_v5  ;;  %v3130_v50 = vpop.eup %3129 }
 0x87c   :  { %v2557_v49 = vadd.f32 %v2556_v16, %v2555_v0 }
 0x87e   :  { %3131 = vtanh.f32 %v2557_v49  ;;  %2568 = vst [vmem:[#allocation15] sm:$0xff] %v2557_v49 }
 0x888   :  { %v3132_v51 = vpop.eup %3131 }
 0x889   :  { %v2559_v52 = vmul.f32 %v3132_v51, %v3130_v50 }
 0x88b   :  { %2561 = vst [vmem:[#allocation12 + $0x38] sm:$0xff] %v2559_v52  ;;  %2567 = vst [vmem:[#allocation13] sm:$0xff] %v2559_v52 }
 0x88c   :  { %3232 = shalt.err (!%p3229_p8)
}
 0x88d   :  { %s3233_s29 = scalar_lea.hbm %s3873_s5, 128 }
 0x88e   :  { %p3234_p9 = scmp.ne.s32.totalorder %s3873_s5, %s3233_s29  ;;  %p3237_p10 = scmp.lt.u32.totalorder %s3233_s29, %s3873_s5 }
 0x890   :  { %p3239_p11 = pnand %p3237_p10, %p3234_p9 }
 0x892   :  { %3242 = shalt.err (!%p3239_p11)
}
 0x893   :  { %2590 = dma.vmem_to_hbm [thread:$0]  %s2588_s21, 128, %s3873_s5, [#allocation14]  }
 0x894   :  { %s3243_s11 = scalar_lea.vmem %s3818_s23, 1024  ;;  %p3248_p13 = scmp.lt.s32.totalorder %s3818_s23, %s3818_s23 }
 0x895   :  { %p3244_p12 = scmp.ne.s32.totalorder %s3818_s23, %s3243_s11  ;;  %p3249_p0 = scmp.lt.s32.totalorder %s3243_s11, %s3243_s11 }
 0x897   :  { %p3250_p1 = por %p3249_p0, %p3248_p13 }
 0x899   :  { %p3251_p2 = pnand %p3250_p1, %p3244_p12 }
 0x89b   :  { %3254 = shalt.err (!%p3251_p2)
}
 0x89c   :  { %s3255_s14 = scalar_lea.hbm %s3872_s4, 1024 }
 0x89d   :  { %p3256_p3 = scmp.ne.s32.totalorder %s3872_s4, %s3255_s14  ;;  %p3259_p4 = scmp.lt.u32.totalorder %s3255_s14, %s3872_s4 }
 0x89f   :  { %p3261_p5 = pnand %p3259_p4, %p3256_p3 }
 0x8a1   :  { %3264 = shalt.err (!%p3261_p5)
}
 0x8a2   :  { %s3309_s5 = smov 128   ;;  %s3310_s19 = smov 8  }
 0x8a3   :  { %2580 = dma.vmem_to_hbm [thread:$0]  %s3818_s23, 1024, %s3872_s4, [#allocation6], %s3309_s5, %s3309_s5, %s3310_s19  }
 0x8a4   :  { %s3265_s1 = scalar_lea.vmem %s3820_s25, 128  ;;  %p3270_p7 = scmp.lt.s32.totalorder %s3820_s25, %s3820_s25 }
 0x8a5   :  { %p3266_p6 = scmp.ne.s32.totalorder %s3820_s25, %s3265_s1  ;;  %p3271_p8 = scmp.lt.s32.totalorder %s3265_s1, %s3265_s1 }
 0x8a7   :  { %p3272_p9 = por %p3271_p8, %p3270_p7 }
 0x8a9   :  { %p3273_p10 = pnand %p3272_p9, %p3266_p6 }
 0x8ab   :  { %3276 = shalt.err (!%p3273_p10)
}
 0x8ac   :  { %s3277_s22 = scalar_lea.hbm %s3874_s6, 128 }
 0x8ad   :  { %p3278_p11 = scmp.ne.s32.totalorder %s3874_s6, %s3277_s22  ;;  %p3281_p12 = scmp.lt.u32.totalorder %s3277_s22, %s3874_s6 }
 0x8af   :  { %p3283_p13 = pnand %p3281_p12, %p3278_p11 }
 0x8b1   :  { %3286 = shalt.err (!%p3283_p13)
}
 0x8b2   :  { %2600 = dma.vmem_to_hbm [thread:$0]  %s3820_s25, 128, %s3874_s6, [#allocation14]  }
 0x8b3   :  { %3293 = dma.done.wait [#allocation6], 1024  }
 0x8b4   :  { %3294 = vsyncadd [#allocation6], 4294966272 }
 0x8b5   :  { %3295 = dma.done.wait [#allocation14], 256  }
 0x8b6   :  { %3296 = vsyncadd [#allocation14], 4294967040 }
 0x8b7   :  { %2610 = vsyncpa [#allocation5], 1 }
 0x8b8   :  { %2611 = vsyncpa [#allocation8], 1 }
 0x8b9   :  { %2612 = vsyncpa [#allocation11], 1 }
 0x8ba   :  { %2613 = vsyncpa [#allocation6], 1 }
 0x8bb   :  { %2614 = vsyncpa [#allocation14], 1 }

</bundles_post_ra>
